<compile_context>
chip_gen: v6e
topology: v6e:2x2x1
jax: 0.10.0
libtpu: 0.0.40
codegen_flags: <defaults>
</compile_context>

<pallas_src>
import jax
import jax.numpy as jnp
from jax.experimental import pallas as pl
from jax.experimental.pallas import tpu as pltpu


HIDDEN = 756        # torch.nn.Linear hidden width in the spec
HIDDEN_PAD = 768    # 6*128 lanes, 3*256 MXU tiles — zero-padded
LANE = 128


def actor_kernel(x_ref, w1_ref, b1_ref, w2_ref, b2_ref, w3_ref, b3_ref, o_ref):
    # Layer 1: Linear + ReLU  (bf16 inputs, f32 accumulation)
    x = x_ref[...].astype(jnp.bfloat16)
    h1 = jnp.dot(x, w1_ref[...], preferred_element_type=jnp.float32) + b1_ref[...]
    h1 = jnp.maximum(h1, 0.0).astype(jnp.bfloat16)

    # Layer 2: Linear + ReLU
    h2 = jnp.dot(h1, w2_ref[...], preferred_element_type=jnp.float32) + b2_ref[...]
    h2 = jnp.maximum(h2, 0.0).astype(jnp.bfloat16)

    # Layer 3: Linear (no activation, faithful to the spec's forward)
    out = jnp.dot(h2, w3_ref[...], preferred_element_type=jnp.float32) + b3_ref[...]
    o_ref[...] = out.astype(o_ref.dtype)


def _max_batch_tile():
    """Generation-aware batch tile: 512 on v6e/v7x, 256 on v5e.

    On v5e the MXU is ~4.6x slower so per-step compute already dominates the
    ~0.35us grid-step overhead at 256 rows; bigger tiles just add f32
    intermediates and vst traffic.  On v6e/v7x, 512 amortizes step overhead.
    """
    try:
        kind = jax.devices()[0].device_kind.lower()
    except Exception:
        kind = ""
    if "v5" in kind and ("lite" in kind or "5e" in kind):
        return 256
    return 512


def actor_forward(state, params):
    """state: (B, state_dim) f32; params: prepared (padded, bf16-weight) dict."""
    w1, b1 = params["w1"], params["b1"]
    w2, b2 = params["w2"], params["b2"]
    w3, b3 = params["w3"], params["b3"]
    action_dim = params["action_dim"]
    action_pad = w3.shape[1]

    B, state_dim = state.shape

    # Batch tiling: single block for small B, otherwise fixed-size tiles with a
    # zero-padded batch tail (grid = cdiv).  Padded rows are discarded below.
    bm_max = _max_batch_tile()
    if B <= bm_max:
        bm = B
        b_padded = B
        x = state
    else:
        bm = bm_max
        b_padded = pl.cdiv(B, bm) * bm
        x = jnp.pad(state, ((0, b_padded - B), (0, 0))) if b_padded != B else state
    grid = (b_padded // bm,)

    # Weights/biases use a constant index_map -> fetched once, stay resident.
    const = lambda a: pl.BlockSpec(a.shape, lambda i: (0,) * a.ndim)

    # VMEM budget: weights + double-buffered I/O tiles + f32/bf16 intermediates,
    # 2x headroom, capped at 32 MiB (safe on all generations incl. v7x 64 MiB).
    weight_bytes = sum(int(a.size) * a.dtype.itemsize
                       for a in (w1, b1, w2, b2, w3, b3))
    io_bytes = 2 * bm * state_dim * 4 + 2 * bm * action_pad * 4
    act_bytes = bm * HIDDEN_PAD * (4 + 2) * 2 + bm * action_pad * 4
    vmem_limit = min(max(2 * (weight_bytes + io_bytes + act_bytes), 8 << 20),
                     32 << 20)

    out = pl.pallas_call(
        actor_kernel,
        out_shape=jax.ShapeDtypeStruct((b_padded, action_pad), jnp.float32),
        grid=grid,
        in_specs=[
            pl.BlockSpec((bm, state_dim), lambda i: (i, 0)),
            const(w1), const(b1), const(w2), const(b2), const(w3), const(b3),
        ],
        out_specs=pl.BlockSpec((bm, action_pad), lambda i: (i, 0)),
        compiler_params=pltpu.CompilerParams(
            dimension_semantics=("parallel",),
            vmem_limit_bytes=int(vmem_limit),
        ),
    )(x, w1, b1, w2, b2, w3, b3)

    return out[:B, :action_dim]


def init_actor_params(key, state_dim, action_dim, hidden=HIDDEN):
    """f32 init mimicking nn.Linear's U(-1/sqrt(fan_in), 1/sqrt(fan_in)).

    Weights are stored transposed vs. torch (in_features, out_features) so the
    kernel computes y = x @ W + b. Biases are (1, out_features) rows.
    """
    ks = jax.random.split(key, 6)

    def linear(kw, kb, fan_in, fan_out):
        bound = 1.0 / jnp.sqrt(jnp.float32(fan_in))
        w = jax.random.uniform(kw, (fan_in, fan_out), jnp.float32, -bound, bound)
        b = jax.random.uniform(kb, (1, fan_out), jnp.float32, -bound, bound)
        return w, b

    w1, b1 = linear(ks[0], ks[1], state_dim, hidden)
    w2, b2 = linear(ks[2], ks[3], hidden, hidden)
    w3, b3 = linear(ks[4], ks[5], hidden, action_dim)
    return {"w1": w1, "b1": b1, "w2": w2, "b2": b2, "w3": w3, "b3": b3}


def prepare_params(params, hidden_pad=HIDDEN_PAD, lane=LANE):
    """Zero-pad hidden 756->768, action_dim->multiple of 128, cast weights bf16.

    Padding is exact: extra hidden units have zero in-weights and zero bias, so
    relu() leaves them at 0, and their zero rows in the next layer contribute
    nothing; padded output lanes are sliced off in the wrapper.  Done once; the
    padded bf16 params are what gets DMA'd every call.
    """
    w1, b1 = params["w1"], params["b1"]
    w2, b2 = params["w2"], params["b2"]
    w3, b3 = params["w3"], params["b3"]

    h = w2.shape[0]
    hpad = hidden_pad - h
    assert hpad >= 0
    action_dim = w3.shape[1]
    action_pad = max(lane, ((action_dim + lane - 1) // lane) * lane)
    apad = action_pad - action_dim

    w1p = jnp.pad(w1, ((0, 0), (0, hpad)))
    b1p = jnp.pad(b1, ((0, 0), (0, hpad)))
    w2p = jnp.pad(w2, ((0, hpad), (0, hpad)))
    b2p = jnp.pad(b2, ((0, 0), (0, hpad)))
    w3p = jnp.pad(w3, ((0, hpad), (0, apad)))
    b3p = jnp.pad(b3, ((0, 0), (0, apad)))

    return {
        "w1": w1p.astype(jnp.bfloat16), "b1": b1p,
        "w2": w2p.astype(jnp.bfloat16), "b2": b2p,
        "w3": w3p.astype(jnp.bfloat16), "b3": b3p,
        "action_dim": action_dim,
    }


def actor_forward_ref(state, prepped):
    """Pure-JAX reference using the same bf16-weight / f32-accumulate math."""
    x = state.astype(jnp.bfloat16)
    h1 = jnp.dot(x, prepped["w1"], preferred_element_type=jnp.float32) + prepped["b1"]
    h1 = jnp.maximum(h1, 0.0).astype(jnp.bfloat16)
    h2 = jnp.dot(h1, prepped["w2"], preferred_element_type=jnp.float32) + prepped["b2"]
    h2 = jnp.maximum(h2, 0.0).astype(jnp.bfloat16)
    out = jnp.dot(h2, prepped["w3"], preferred_element_type=jnp.float32) + prepped["b3"]
    return out[:, :prepped["action_dim"]]


if __name__ == "__main__":
    key = jax.random.PRNGKey(0)
    k_param, k_state, k_state2 = jax.random.split(key, 3)

    batch = 2
    state_dim = 16
    action_dim = 1

    raw_params = init_actor_params(k_param, state_dim, action_dim)
    params = prepare_params(raw_params)
    state = jax.random.normal(k_state, (batch, state_dim), jnp.float32)

    # Small-batch (single tile) path.
    out = actor_forward(state, params)
    out = jax.block_until_ready(out)
    ref = actor_forward_ref(state, params)
    assert out.shape == (batch, action_dim)
    assert jnp.allclose(out, ref, atol=1e-3, rtol=1e-3), "mismatch vs bf16 reference"

    # Sanity check against full-precision unpadded math (bf16 rounding only).
    f32_ref = jnp.maximum(state @ raw_params["w1"] + raw_params["b1"], 0.0)
    f32_ref = jnp.maximum(f32_ref @ raw_params["w2"] + raw_params["b2"], 0.0)
    f32_ref = f32_ref @ raw_params["w3"] + raw_params["b3"]
    assert jnp.allclose(out, f32_ref, atol=5e-2, rtol=5e-2), "mismatch vs f32 reference"

    # Tiled path with a ragged batch (exercises cdiv grid + zero-padded tail).
    big_batch = _max_batch_tile() + 8
    state2 = jax.random.normal(k_state2, (big_batch, state_dim), jnp.float32)
    out2 = jax.block_until_ready(actor_forward(state2, params))
    ref2 = actor_forward_ref(state2, params)
    assert out2.shape == (big_batch, action_dim)
    assert jnp.allclose(out2, ref2, atol=2e-3, rtol=2e-3), "mismatch on tiled path"

    print("KERNEL_OK")
</pallas_src>

<mosaic_0001>
module attributes {stable_mosaic.version = 11 : i64} {
  func.func @actor_kernel(%arg0: i32, %arg1: memref<2x16xf32, #tpu.memory_space<vmem>>, %arg2: memref<16x768xbf16, #tpu.memory_space<vmem>>, %arg3: memref<1x768xf32, #tpu.memory_space<vmem>>, %arg4: memref<768x768xbf16, #tpu.memory_space<vmem>>, %arg5: memref<1x768xf32, #tpu.memory_space<vmem>>, %arg6: memref<768x128xbf16, #tpu.memory_space<vmem>>, %arg7: memref<1x128xf32, #tpu.memory_space<vmem>>, %arg8: memref<2x128xf32, #tpu.memory_space<vmem>>) attributes {dimension_semantics = [#tpu.dimension_semantics<parallel>], iteration_bounds = array<i64: 1>, scalar_prefetch = 0 : i64, scratch_operands = 0 : i64, tpu.core_type = #tpu.core_type<tc>, window_params = [{transform_indices = @transform_0, window_bounds = array<i64: 2, 16>}, {pipeline_mode = #tpu.pipeline_mode<synchronous>, transform_indices = @transform_1, window_bounds = array<i64: 16, 768>}, {pipeline_mode = #tpu.pipeline_mode<synchronous>, transform_indices = @transform_2, window_bounds = array<i64: 1, 768>}, {pipeline_mode = #tpu.pipeline_mode<synchronous>, transform_indices = @transform_3, window_bounds = array<i64: 768, 768>}, {pipeline_mode = #tpu.pipeline_mode<synchronous>, transform_indices = @transform_4, window_bounds = array<i64: 1, 768>}, {pipeline_mode = #tpu.pipeline_mode<synchronous>, transform_indices = @transform_5, window_bounds = array<i64: 768, 128>}, {pipeline_mode = #tpu.pipeline_mode<synchronous>, transform_indices = @transform_6, window_bounds = array<i64: 1, 128>}, {transform_indices = @transform_7, window_bounds = array<i64: 2, 128>}]} {
    %c0 = arith.constant 0 : index
    %c0_0 = arith.constant 0 : index
    %0 = vector.load %arg1[%c0, %c0_0] : memref<2x16xf32, #tpu.memory_space<vmem>>, vector<2x16xf32>
    %1 = arith.truncf %0 : vector<2x16xf32> to vector<2x16xbf16>
    %c0_1 = arith.constant 0 : index
    %c0_2 = arith.constant 0 : index
    %2 = vector.load %arg2[%c0_1, %c0_2] : memref<16x768xbf16, #tpu.memory_space<vmem>>, vector<16x768xbf16>
    %cst = arith.constant dense<0.000000e+00> : vector<2x768xf32>
    %3 = tpu.matmul %1, %2, %cst {dimension_numbers = #tpu.dot_dimension_numbers<[1], [0], [0], [1], [0, 0, 1, 1], [], []>} : vector<2x16xbf16>, vector<16x768xbf16>, vector<2x768xf32> -> vector<2x768xf32>
    %c0_3 = arith.constant 0 : index
    %c0_4 = arith.constant 0 : index
    %4 = vector.load %arg3[%c0_3, %c0_4] : memref<1x768xf32, #tpu.memory_space<vmem>>, vector<1x768xf32>
    %5 = vector.broadcast %4 : vector<1x768xf32> to vector<2x768xf32>
    %6 = arith.addf %3, %5 : vector<2x768xf32>
    %cst_5 = arith.constant 0.000000e+00 : f32
    %7 = vector.broadcast %cst_5 : f32 to vector<2x768xf32>
    %8 = arith.maximumf %6, %7 : vector<2x768xf32>
    %9 = arith.truncf %8 : vector<2x768xf32> to vector<2x768xbf16>
    %c0_6 = arith.constant 0 : index
    %c0_7 = arith.constant 0 : index
    %10 = vector.load %arg4[%c0_6, %c0_7] : memref<768x768xbf16, #tpu.memory_space<vmem>>, vector<768x768xbf16>
    %cst_8 = arith.constant dense<0.000000e+00> : vector<2x768xf32>
    %11 = tpu.matmul %9, %10, %cst_8 {dimension_numbers = #tpu.dot_dimension_numbers<[1], [0], [0], [1], [0, 0, 1, 1], [], []>} : vector<2x768xbf16>, vector<768x768xbf16>, vector<2x768xf32> -> vector<2x768xf32>
    %c0_9 = arith.constant 0 : index
    %c0_10 = arith.constant 0 : index
    %12 = vector.load %arg5[%c0_9, %c0_10] : memref<1x768xf32, #tpu.memory_space<vmem>>, vector<1x768xf32>
    %13 = vector.broadcast %12 : vector<1x768xf32> to vector<2x768xf32>
    %14 = arith.addf %11, %13 : vector<2x768xf32>
    %cst_11 = arith.constant 0.000000e+00 : f32
    %15 = vector.broadcast %cst_11 : f32 to vector<2x768xf32>
    %16 = arith.maximumf %14, %15 : vector<2x768xf32>
    %17 = arith.truncf %16 : vector<2x768xf32> to vector<2x768xbf16>
    %c0_12 = arith.constant 0 : index
    %c0_13 = arith.constant 0 : index
    %18 = vector.load %arg6[%c0_12, %c0_13] : memref<768x128xbf16, #tpu.memory_space<vmem>>, vector<768x128xbf16>
    %cst_14 = arith.constant dense<0.000000e+00> : vector<2x128xf32>
    %19 = tpu.matmul %17, %18, %cst_14 {dimension_numbers = #tpu.dot_dimension_numbers<[1], [0], [0], [1], [0, 0, 1, 1], [], []>} : vector<2x768xbf16>, vector<768x128xbf16>, vector<2x128xf32> -> vector<2x128xf32>
    %c0_15 = arith.constant 0 : index
    %c0_16 = arith.constant 0 : index
    %20 = vector.load %arg7[%c0_15, %c0_16] : memref<1x128xf32, #tpu.memory_space<vmem>>, vector<1x128xf32>
    %21 = vector.broadcast %20 : vector<1x128xf32> to vector<2x128xf32>
    %22 = arith.addf %19, %21 : vector<2x128xf32>
    %c0_17 = arith.constant 0 : index
    %c0_18 = arith.constant 0 : index
    %23 = vector.load %arg8[%c0_17, %c0_18] : memref<2x128xf32, #tpu.memory_space<vmem>>, vector<2x128xf32>
    tpu.vector_store %arg8[%c0_17, %c0_18], %22 {strides = array<i32>} : memref<2x128xf32, #tpu.memory_space<vmem>>, vector<2x128xf32>,
    return
  }
  func.func @transform_0(%arg0: i32) -> (i32, i32) {
    %c0_i32 = arith.constant 0 : i32
    %c0_i32_0 = arith.constant 0 : i32
    return %arg0, %c0_i32 : i32, i32
  }
  func.func @transform_1(%arg0: i32) -> (i32, i32) {
    %c0_i32 = arith.constant 0 : i32
    %c0_i32_0 = arith.constant 0 : i32
    %c0_i32_1 = arith.constant 0 : i32
    return %c0_i32, %c0_i32_0 : i32, i32
  }
  func.func @transform_2(%arg0: i32) -> (i32, i32) {
    %c0_i32 = arith.constant 0 : i32
    %c0_i32_0 = arith.constant 0 : i32
    %c0_i32_1 = arith.constant 0 : i32
    return %c0_i32, %c0_i32_0 : i32, i32
  }
  func.func @transform_3(%arg0: i32) -> (i32, i32) {
    %c0_i32 = arith.constant 0 : i32
    %c0_i32_0 = arith.constant 0 : i32
    %c0_i32_1 = arith.constant 0 : i32
    return %c0_i32, %c0_i32_0 : i32, i32
  }
  func.func @transform_4(%arg0: i32) -> (i32, i32) {
    %c0_i32 = arith.constant 0 : i32
    %c0_i32_0 = arith.constant 0 : i32
    %c0_i32_1 = arith.constant 0 : i32
    return %c0_i32, %c0_i32_0 : i32, i32
  }
  func.func @transform_5(%arg0: i32) -> (i32, i32) {
    %c0_i32 = arith.constant 0 : i32
    %c0_i32_0 = arith.constant 0 : i32
    %c0_i32_1 = arith.constant 0 : i32
    return %c0_i32, %c0_i32_0 : i32, i32
  }
  func.func @transform_6(%arg0: i32) -> (i32, i32) {
    %c0_i32 = arith.constant 0 : i32
    %c0_i32_0 = arith.constant 0 : i32
    %c0_i32_1 = arith.constant 0 : i32
    return %c0_i32, %c0_i32_0 : i32, i32
  }
  func.func @transform_7(%arg0: i32) -> (i32, i32) {
    %c0_i32 = arith.constant 0 : i32
    %c0_i32_0 = arith.constant 0 : i32
    return %arg0, %c0_i32 : i32, i32
  }
}

</mosaic_0001>

<bundles_post_ra>
// kernel: tpu_custom_call.1
= control target key start
LH: loop header
LB: loop body
LE: loop exit
PB: predicated region body
PF: predicated region fallthrough
CT: control target
= control target key end

     0   :  { %12 = vsyncpa [#allocation3], 0  ;;  %s4258_s0 = inlined_call_operand.hbm [shape: f32[2,16], index: 0, kind: input, shape index: {}]   ;;  %s4259_s1 = inlined_call_operand.hbm [shape: bf16[16,768], index: 1, kind: input, shape index: {}]   ;;  %s4260_s2 = inlined_call_operand.hbm [shape: f32[1,768], index: 2, kind: input, shape index: {}]   ;;  %s4261_s3 = inlined_call_operand.hbm [shape: bf16[768,768], index: 3, kind: input, shape index: {}]   ;;  %s4262_s4 = inlined_call_operand.hbm [shape: f32[1,768], index: 4, kind: input, shape index: {}]   ;;  %s4263_s5 = inlined_call_operand.hbm [shape: bf16[768,128], index: 5, kind: input, shape index: {}]   ;;  %s4264_s6 = inlined_call_operand.hbm [shape: f32[1,128], index: 6, kind: input, shape index: {}]   ;;  %s4265_s7 = inlined_call_operand.hbm [shape: f32[2,128], index: 7, kind: output, shape index: {}]  }
   0x1   :  { %13 = vsyncpa [#allocation6], 0 }
   0x2   :  { %14 = vsyncpa [#allocation9], 0 }
   0x3   :  { %15 = vsyncpa [#allocation12], 0 }
   0x4   :  { %16 = vsyncpa [#allocation4], 0  ;;  %s4079_s24 = smov [#allocation5]  }
   0x5   :  { %s32_s25 = sshll.u32 %s4079_s24, 4  ;;  %s33_s25 = int_to_ptr.vmem [resolvable:$true] %s32_s25 }
   0x6   :  { %s3917_s26 = scalar_lea.vmem %s33_s25, 768  ;;  %p3922_p1 = scmp.lt.s32.totalorder %s33_s25, %s33_s25 }
   0x7   :  { %p3918_p0 = scmp.ne.s32.totalorder %s33_s25, %s3917_s26  ;;  %p3923_p2 = scmp.lt.s32.totalorder %s3917_s26, %s3917_s26 }
   0x9   :  { %p3924_p3 = por %p3923_p2, %p3922_p1 }
   0xb   :  { %p3925_p4 = pnand %p3924_p3, %p3918_p0 }
   0xd   :  { %3928 = shalt.err (!%p3925_p4)
}
   0xe   :  { %s4080_s27 = smov 384   ;;  %s4081_s28 = smov 24  }
   0xf   :  { %38 = dma.hbm_to_vmem [thread:$0]  %s4259_s1, 768, %s33_s25, [#allocation6], %s4080_s27, %s4080_s27, %s4081_s28  }
  0x10   :  { %s4082_s8 = smov [#allocation8]   ;;  %s4083_s10 = smov [#allocation11]  }
  0x11   :  { %s54_s9 = sshll.u32 %s4082_s8, 4  ;;  %s76_s11 = sshll.u32 %s4083_s10, 4  ;;  %s55_s9 = int_to_ptr.vmem [resolvable:$true] %s54_s9  ;;  %s77_s11 = int_to_ptr.vmem [resolvable:$true] %s76_s11 }
  0x12   :  { %s3937_s12 = scalar_lea.vmem %s55_s9, 36864  ;;  %p3942_p6 = scmp.lt.s32.totalorder %s55_s9, %s55_s9 }
  0x13   :  { %p3938_p5 = scmp.ne.s32.totalorder %s55_s9, %s3937_s12  ;;  %p3943_p7 = scmp.lt.s32.totalorder %s3937_s12, %s3937_s12 }
  0x15   :  { %p3944_p8 = por %p3943_p7, %p3942_p6 }
  0x17   :  { %p3945_p9 = pnand %p3944_p8, %p3938_p5 }
  0x19   :  { %3948 = shalt.err (!%p3945_p9)
}
  0x1a   :  { %60 = dma.hbm_to_vmem [thread:$0]  %s4261_s3, 36864, %s55_s9, [#allocation9], %s4080_s27, %s4080_s27, %s4081_s28  }
  0x1b   :  { %s3957_s15 = scalar_lea.vmem %s77_s11, 6144  ;;  %p3962_p11 = scmp.lt.s32.totalorder %s77_s11, %s77_s11 }
  0x1c   :  { %p3958_p10 = scmp.ne.s32.totalorder %s77_s11, %s3957_s15  ;;  %p3963_p12 = scmp.lt.s32.totalorder %s3957_s15, %s3957_s15 }
  0x1e   :  { %p3964_p13 = por %p3963_p12, %p3962_p11 }
  0x20   :  { %p3965_p0 = pnand %p3964_p13, %p3958_p10 }
  0x22   :  { %3968 = shalt.err (!%p3965_p0)
}
  0x23   :  { %s4084_s1 = smov 64   ;;  %s4085_s16 = smov 4  }
  0x24   :  { %82 = dma.hbm_to_vmem [thread:$0]  %s4263_s5, 6144, %s77_s11, [#allocation12], %s4084_s1, %s4084_s1, %s4085_s16  }
  0x25   :  { %s4086_s19 = smov [#allocation2]   ;;  %s4087_s21 = smov [#allocation7]  }
  0x26   :  { %s23_s20 = sshll.u32 %s4086_s19, 4  ;;  %s45_s22 = sshll.u32 %s4087_s21, 4  ;;  %s24_s20 = int_to_ptr.vmem [resolvable:$true] %s23_s20  ;;  %s46_s22 = int_to_ptr.vmem [resolvable:$true] %s45_s22 }
  0x27   :  { %s3977_s3 = scalar_lea.vmem %s24_s20, 32  ;;  %p3982_p2 = scmp.lt.s32.totalorder %s24_s20, %s24_s20 }
  0x28   :  { %p3978_p1 = scmp.ne.s32.totalorder %s24_s20, %s3977_s3  ;;  %p3983_p3 = scmp.lt.s32.totalorder %s3977_s3, %s3977_s3 }
  0x2a   :  { %p3984_p4 = por %p3983_p3, %p3982_p2 }
  0x2c   :  { %p3985_p5 = pnand %p3984_p4, %p3978_p1 }
  0x2e   :  { %3988 = shalt.err (!%p3985_p5)
}
  0x2f   :  { %26 = dma.hbm_to_vmem [thread:$0]  %s4258_s0, 32, %s24_s20, [#allocation3]  }
  0x30   :  { %s3997_s25 = scalar_lea.vmem %s46_s22, 96  ;;  %p4002_p7 = scmp.lt.s32.totalorder %s46_s22, %s46_s22 }
  0x31   :  { %p3998_p6 = scmp.ne.s32.totalorder %s46_s22, %s3997_s25  ;;  %p4003_p8 = scmp.lt.s32.totalorder %s3997_s25, %s3997_s25 }
  0x33   :  { %p4004_p9 = por %p4003_p8, %p4002_p7 }
  0x35   :  { %p4005_p10 = pnand %p4004_p9, %p3998_p6 }
  0x37   :  { %4008 = shalt.err (!%p4005_p10)
}
  0x38   :  { %48 = dma.hbm_to_vmem [thread:$0]  %s4260_s2, 96, %s46_s22, [#allocation6]  }
  0x39   :  { %s4088_s27 = smov [#allocation10]   ;;  %s4089_s29 = smov [#allocation13]  }
  0x3a   :  { %s67_s28 = sshll.u32 %s4088_s27, 4  ;;  %s89_s30 = sshll.u32 %s4089_s29, 4  ;;  %s68_s28 = int_to_ptr.vmem [resolvable:$true] %s67_s28  ;;  %s90_s30 = int_to_ptr.vmem [resolvable:$true] %s89_s30 }
  0x3b   :  { %s4017_s8 = scalar_lea.vmem %s68_s28, 96  ;;  %p4022_p12 = scmp.lt.s32.totalorder %s68_s28, %s68_s28 }
  0x3c   :  { %p4018_p11 = scmp.ne.s32.totalorder %s68_s28, %s4017_s8  ;;  %p4023_p13 = scmp.lt.s32.totalorder %s4017_s8, %s4017_s8 }
  0x3e   :  { %p4024_p0 = por %p4023_p13, %p4022_p12 }
  0x40   :  { %p4025_p1 = pnand %p4024_p0, %p4018_p11 }
  0x42   :  { %4028 = shalt.err (!%p4025_p1)
}
  0x43   :  { %70 = dma.hbm_to_vmem [thread:$0]  %s4262_s4, 96, %s68_s28, [#allocation9]  }
  0x44   :  { %s4037_s10 = scalar_lea.vmem %s90_s30, 16  ;;  %s4041_s2 = scalar_lea.vmem %s90_s30, 32 }
  0x45   :  { %p4038_p2 = scmp.ne.s32.totalorder %s90_s30, %s4037_s10  ;;  %p4042_p3 = scmp.lt.s32.totalorder %s90_s30, %s90_s30 }
  0x46   :  { %p4043_p4 = scmp.lt.s32.totalorder %s4041_s2, %s4037_s10 }
  0x48   :  { %p4044_p5 = por %p4043_p4, %p4042_p3 }
  0x4a   :  { %p4045_p6 = pnand %p4044_p5, %p4038_p2 }
  0x4c   :  { %4048 = shalt.err (!%p4045_p6)
}
  0x4d   :  { %92 = dma.hbm_to_vmem [thread:$0]  %s4264_s6, 16, %s90_s30, [#allocation12]  }
  0x4e   :  { %4069 = dma.done.wait [#allocation3], 32  }
  0x4f   :  { %4070 = vsyncadd [#allocation3], 4294967264 }
  0x50   :  { %4071 = dma.done.wait [#allocation6], 864  }
  0x51   :  { %4072 = vsyncadd [#allocation6], 4294966432 }
  0x52   :  { %4073 = dma.done.wait [#allocation9], 36960  }
  0x53   :  { %4074 = vsyncadd [#allocation9], 4294930336 }
  0x54   :  { %4075 = dma.done.wait [#allocation12], 6160  }
  0x55   :  { %4076 = vsyncadd [#allocation12], 4294961136  ;;  %v4090_v0 = vmov 0   ;;  %v3420_v1 = vld [vmem:[#allocation5 + $0x4] ss:$24 sps:$4 sm:$0xff]   ;;  %vm185_vm0 = vcmask 130048  }
  0x56   :  { %221 = vmatprep.mubr.bf16.mxu0 %v4090_v0  ;;  %v3422_v2 = vld [vmem:[#allocation5] ss:$24 sps:$4 sm:$0xff]   ;;  %v115_v3 = vld [vmem:[#allocation2] sm:$0x3]  ;;  %203 = vmatprep.subr.bf16.mxu0 %v3420_v1  ;;  %v3425_v5 = vld [vmem:[#allocation5 + $0xc] ss:$24 sps:$4 sm:$0xff]  }
  0x57   :  { %v116_v4 = vpack.c.bf16 %v115_v3, %v115_v3  ;;  %204 = vmatpush1.bf16.msra.mxu0 %v3422_v2  ;;  %v3423_v6 = vld [vmem:[#allocation5 + $0x8] ss:$24 sps:$4 sm:$0xff]   ;;  %v3428_v7 = vld [vmem:[#allocation5 + $0x14] ss:$24 sps:$4 sm:$0xff]   ;;  %s4091_s4 = smov [#allocation14]  }
  0x58   :  { %244 = vmatprep.subr.bf16.mxu0 %v3425_v5  ;;  %v3429_v8 = vld [vmem:[#allocation8 + $0x154] ss:$24 sps:$4 sm:$0xff]   ;;  %v3431_v9 = vld [vmem:[#allocation8 + $0x150] ss:$24 sps:$4 sm:$0xff]   ;;  %v3432_v10 = vld [vmem:[#allocation8 + $0x124] ss:$24 sps:$4 sm:$0xff]  }
  0x59   :  { %2084 = vmatprep.subr.bf16.mxu1 %v3429_v8  ;;  %v3434_v11 = vld [vmem:[#allocation8 + $0x120] ss:$24 sps:$4 sm:$0xff]   ;;  %v3435_v12 = vld [vmem:[#allocation8 + $0xf4] ss:$24 sps:$4 sm:$0xff]   ;;  %v3440_v15 = vld [vmem:[#allocation8 + $0xf0] ss:$24 sps:$4 sm:$0xff]  }
  0x5a   :  { %3001 = vmatmul.mubr.msk.bf16.vlgmr.msra.gmra.mxu0 %vm185_vm0, %v116_v4  ;;  %2085 = vmatpush1.bf16.msra.mxu1 %v3431_v9  ;;  %v3426_v13 = vld [vmem:[#allocation5 + $0x10] ss:$24 sps:$4 sm:$0xff]   ;;  %s2983_s6 = sshll.u32 %s4091_s4, 4  ;;  %s2984_s6 = int_to_ptr.vmem [resolvable:$true] %s2983_s6 }
  0x5b   :  { %245 = vmatpush1.bf16.msra.mxu0 %v3423_v6  ;;  %262 = vmatprep.mubr.bf16.mxu0 %v4090_v0  ;;  %v3439_v14 = vld [vmem:[#allocation8 + $0x454] ss:$24 sps:$4 sm:$0xff]   ;;  %v3441_v16 = vld [vmem:[#allocation8 + $0xc4] ss:$24 sps:$4 sm:$0xff]   ;;  %v3446_v17 = vld [vmem:[#allocation8 + $0xc0] ss:$24 sps:$4 sm:$0xff]   ;;  %p4054_p8 = scmp.lt.s32.totalorder %s2984_s6, %s2984_s6 }
  0x5c   :  { %285 = vmatprep.subr.bf16.mxu0 %v3428_v7  ;;  %2086 = vmatprep.subr.bf16.mxu1 %v3432_v10  ;;  %v3447_v18 = vld [vmem:[#allocation8 + $0x94] ss:$24 sps:$4 sm:$0xff]   ;;  %v3437_v19 = vld [vmem:[#allocation8 + $0x450] ss:$24 sps:$4 sm:$0xff]   ;;  %v3445_v20 = vld [vmem:[#allocation8 + $0x424] ss:$24 sps:$4 sm:$0xff]  }
  0x5d   :  { %v3452_v21 = vld [vmem:[#allocation8 + $0x90] ss:$24 sps:$4 sm:$0xff]   ;;  %v3453_v22 = vld [vmem:[#allocation8 + $0x64] ss:$24 sps:$4 sm:$0xff]   ;;  %v3443_v23 = vld [vmem:[#allocation8 + $0x420] ss:$24 sps:$4 sm:$0xff]  }
  0x5e   :  { %2087 = vmatpush1.bf16.msra.mxu1 %v3434_v11  ;;  %v3451_v24 = vld [vmem:[#allocation8 + $0x3f4] ss:$24 sps:$4 sm:$0xff]   ;;  %v3458_v25 = vld [vmem:[#allocation8 + $0x60] ss:$24 sps:$4 sm:$0xff]   ;;  %v3449_v27 = vld [vmem:[#allocation8 + $0x3f0] ss:$24 sps:$4 sm:$0xff]   ;;  %v125_v11 = vlaneseq }
  0x5f   :  { %2088 = vmatprep.subr.bf16.mxu1 %v3435_v12  ;;  %v3459_v26 = vld [vmem:[#allocation8 + $0x34] ss:$24 sps:$4 sm:$0xff]   ;;  %v3457_v28 = vld [vmem:[#allocation8 + $0x3c4] ss:$24 sps:$4 sm:$0xff]   ;;  %v3464_v29 = vld [vmem:[#allocation8 + $0x30] ss:$24 sps:$4 sm:$0xff]  }
  0x60   :  { %v3465_v30 = vld [vmem:[#allocation8 + $0x4] ss:$24 sps:$4 sm:$0xff]   ;;  %v3455_v31 = vld [vmem:[#allocation8 + $0x3c0] ss:$24 sps:$4 sm:$0xff]   ;;  %v3463_v32 = vld [vmem:[#allocation8 + $0x394] ss:$24 sps:$4 sm:$0xff]  }
  0x61   :  { %v3470_v33 = vld [vmem:[#allocation8] ss:$24 sps:$4 sm:$0xff]   ;;  %v3471_v34 = vld [vmem:[#allocation8 + $0x2d4] ss:$24 sps:$4 sm:$0xff]   ;;  %v3461_v35 = vld [vmem:[#allocation8 + $0x390] ss:$24 sps:$4 sm:$0xff]  }
  0x62   :  { %3002 = vmatmul.mubr.msk.bf16.vlgmr.msra.gmra.mxu0 %vm185_vm0, %v116_v4  ;;  %2089 = vmatpush1.bf16.msra.mxu1 %v3440_v15  ;;  %v3469_v36 = vld [vmem:[#allocation8 + $0x364] ss:$24 sps:$4 sm:$0xff]   ;;  %v3476_v37 = vld [vmem:[#allocation8 + $0x2d0] ss:$24 sps:$4 sm:$0xff]   ;;  %v3467_v38 = vld [vmem:[#allocation8 + $0x360] ss:$24 sps:$4 sm:$0xff]  }
  0x63   :  { %286 = vmatpush1.bf16.msra.mxu0 %v3426_v13  ;;  %303 = vmatprep.mubr.bf16.mxu0 %v4090_v0  ;;  %v3475_v39 = vld [vmem:[#allocation8 + $0x334] ss:$24 sps:$4 sm:$0xff]   ;;  %v3477_v40 = vld [vmem:[#allocation8 + $0x2a4] ss:$24 sps:$4 sm:$0xff]   ;;  %v3482_v41 = vld [vmem:[#allocation8 + $0x2a0] ss:$24 sps:$4 sm:$0xff]  }
  0x64   :  { %2125 = vmatprep.subr.bf16.mxu0 %v3439_v14  ;;  %2090 = vmatprep.subr.bf16.mxu1 %v3441_v16  ;;  %v3483_v42 = vld [vmem:[#allocation8 + $0x274] ss:$24 sps:$4 sm:$0xff]   ;;  %v3473_v43 = vld [vmem:[#allocation8 + $0x330] ss:$24 sps:$4 sm:$0xff]   ;;  %v3481_v44 = vld [vmem:[#allocation8 + $0x304] ss:$24 sps:$4 sm:$0xff]  }
  0x65   :  { %v3488_v45 = vld [vmem:[#allocation8 + $0x270] ss:$24 sps:$4 sm:$0xff]   ;;  %v3489_v46 = vld [vmem:[#allocation8 + $0x244] ss:$24 sps:$4 sm:$0xff]   ;;  %v3479_v47 = vld [vmem:[#allocation8 + $0x300] ss:$24 sps:$4 sm:$0xff]  }
  0x66   :  { %2091 = vmatpush1.bf16.msra.mxu1 %v3446_v17  ;;  %v3487_v48 = vld [vmem:[#allocation8 + $0x5d4] ss:$24 sps:$4 sm:$0xff]   ;;  %v3494_v49 = vld [vmem:[#allocation8 + $0x240] ss:$24 sps:$4 sm:$0xff]   ;;  %v3485_v51 = vld [vmem:[#allocation8 + $0x5d0] ss:$24 sps:$4 sm:$0xff]  }
  0x67   :  { %2092 = vmatprep.subr.bf16.mxu1 %v3447_v18  ;;  %v3495_v50 = vld [vmem:[#allocation8 + $0x214] ss:$24 sps:$4 sm:$0xff]   ;;  %v3493_v52 = vld [vmem:[#allocation8 + $0x5a4] ss:$24 sps:$4 sm:$0xff]   ;;  %v3500_v53 = vld [vmem:[#allocation8 + $0x210] ss:$24 sps:$4 sm:$0xff]  }
  0x68   :  { %v3501_v54 = vld [vmem:[#allocation8 + $0x1e4] ss:$24 sps:$4 sm:$0xff]   ;;  %v3491_v55 = vld [vmem:[#allocation8 + $0x5a0] ss:$24 sps:$4 sm:$0xff]   ;;  %v3499_v56 = vld [vmem:[#allocation8 + $0x574] ss:$24 sps:$4 sm:$0xff]  }
  0x69   :  { %v3506_v57 = vld [vmem:[#allocation8 + $0x1e0] ss:$24 sps:$4 sm:$0xff]   ;;  %v3497_v58 = vld [vmem:[#allocation8 + $0x570] ss:$24 sps:$4 sm:$0xff]   ;;  %v3505_v59 = vld [vmem:[#allocation8 + $0x544] ss:$24 sps:$4 sm:$0xff]  }
  0x6a   :  { %3003 = vmatmul.mubr.msk.bf16.vlgmr.msra.gmra.mxu0 %vm185_vm0, %v116_v4  ;;  %2093 = vmatpush1.bf16.msra.mxu1 %v3452_v21  ;;  %v3503_v60 = vld [vmem:[#allocation8 + $0x540] ss:$24 sps:$4 sm:$0xff]   ;;  %v3507_v61 = vld [vmem:[#allocation8 + $0x1b4] ss:$24 sps:$4 sm:$0xff]   ;;  %v3509_v63 = vld [vmem:[#allocation8 + $0x510] ss:$24 sps:$4 sm:$0xff]  }
  0x6b   :  { %2126 = vmatpush1.bf16.msra.mxu0 %v3437_v19  ;;  %2094 = vmatprep.subr.bf16.mxu1 %v3453_v22  ;;  %v3511_v62 = vld [vmem:[#allocation8 + $0x514] ss:$24 sps:$4 sm:$0xff]   ;;  %v3512_v0 = vld [vmem:[#allocation8 + $0x1b0] ss:$24 sps:$4 sm:$0xff]   ;;  %v3513_v1 = vld [vmem:[#allocation8 + $0x184] ss:$24 sps:$4 sm:$0xff]  }
  0x6c   :  { %2127 = vmatprep.subr.bf16.mxu0 %v3445_v20  ;;  %v3517_v2 = vld [vmem:[#allocation8 + $0x4e4] ss:$24 sps:$4 sm:$0xff]   ;;  %v3515_v3 = vld [vmem:[#allocation8 + $0x4e0] ss:$24 sps:$4 sm:$0xff]   ;;  %v3521_v5 = vld [vmem:[#allocation8 + $0x4b4] ss:$24 sps:$4 sm:$0xff]  }
  0x6d   :  { %v3518_v4 = vld [vmem:[#allocation8 + $0x180] ss:$24 sps:$4 sm:$0xff]   ;;  %v3524_v6 = vld [vmem:[#allocation8 + $0x754] ss:$24 sps:$4 sm:$0xff]   ;;  %v3519_v7 = vld [vmem:[#allocation8 + $0x4b0] ss:$24 sps:$4 sm:$0xff]  }
  0x6e   :  { %2095 = vmatpush1.bf16.msra.mxu1 %v3458_v25  ;;  %v3527_v8 = vld [vmem:[#allocation8 + $0x484] ss:$24 sps:$4 sm:$0xff]   ;;  %v3525_v9 = vld [vmem:[#allocation8 + $0x480] ss:$24 sps:$4 sm:$0xff]   ;;  %v4156_v12 = vshrl.u32 %v125_v11, 7  ;;  %s4049_s13 = scalar_lea.vmem %s2984_s6, 32 }
  0x6f   :  { %2128 = vmatpush1.bf16.msra.mxu0 %v3443_v23  ;;  %2096 = vmatprep.subr.bf16.mxu1 %v3459_v26  ;;  %v3536_v10 = vld [vmem:[#allocation8 + $0x15c] ss:$24 sps:$4 sm:$0xff]   ;;  %v3561_v11 = vld [vmem:[#allocation8 + $0x600] ss:$24 sps:$4 sm:$0xff]   ;;  %p4050_p7 = scmp.ne.s32.totalorder %s2984_s6, %s4049_s13  ;;  %p4055_p9 = scmp.lt.s32.totalorder %s4049_s13, %s4049_s13 }
  0x70   :  { %2129 = vmatprep.subr.bf16.mxu0 %v3451_v24  ;;  %v127_v13 = vsub.s32 0, %v4156_v12  ;;  %v4159_v14 = vld [vmem:[#allocation7] sm:$0x3f]  ;;  %v131_v15 = vsub.s32 1, %v4156_v12  ;;  %v135_v20 = vsub.s32 2, %v4156_v12  ;;  %v139_v23 = vsub.s32 3, %v4156_v12 }
  0x71   :  { %p4056_p10 = por %p4055_p9, %p4054_p8 }
  0x72   :  { %2097 = vmatpush1.bf16.msra.mxu1 %v3464_v29  ;;  %v128_v16 = vrot.slane %v4159_v14, %v127_v13  ;;  %v132_v17 = vrot.slane %v4159_v14, %v131_v15 }
  0x73   :  { %2130 = vmatpush1.bf16.msra.mxu0 %v3449_v27  ;;  %2098 = vmatprep.subr.bf16.mxu1 %v3465_v30  ;;  %v136_v27 = vrot.slane %v4159_v14, %v135_v20  ;;  %v3522_v30 = vld [vmem:[#allocation8 + $0x750] ss:$24 sps:$4 sm:$0xff]   ;;  %p4057_p11 = pnand %p4056_p10, %p4050_p7 }
  0x74   :  { %2131 = vmatprep.subr.bf16.mxu0 %v3457_v28 }
  0x76   :  { %2099 = vmatpush1.bf16.msra.mxu1 %v3470_v33 }
  0x77   :  { %2132 = vmatpush1.bf16.msra.mxu0 %v3455_v31  ;;  %2100 = vmatprep.subr.bf16.mxu1 %v3471_v34  ;;  %v140_v31 = vrot.slane %v4159_v14, %v139_v23  ;;  %v3530_v34 = vld [vmem:[#allocation8 + $0x724] ss:$24 sps:$4 sm:$0xff]  }
  0x78   :  { %2133 = vmatprep.subr.bf16.mxu0 %v3463_v32 }
  0x7a   :  { %2101 = vmatpush2.bf16.msra.mxu1 %v3476_v37 }
  0x7b   :  { %2134 = vmatpush1.bf16.msra.mxu0 %v3461_v35  ;;  %2102 = vmatprep.subr.bf16.mxu1 %v3477_v40  ;;  %v147_v40 = vsub.s32 5, %v4156_v12 }
  0x7c   :  { %2135 = vmatprep.subr.bf16.mxu0 %v3469_v36 }
  0x7e   :  { %2103 = vmatpush2.bf16.msra.mxu1 %v3482_v41  ;;  %v3533_v41 = vld [vmem:[#allocation8 + $0x6f4] ss:$24 sps:$4 sm:$0xff]  }
  0x7f   :  { %2136 = vmatpush1.bf16.msra.mxu0 %v3467_v38  ;;  %2104 = vmatprep.subr.bf16.mxu1 %v3483_v42 }
  0x80   :  { %2137 = vmatprep.subr.bf16.mxu0 %v3475_v39  ;;  %v3528_v39 = vld [vmem:[#allocation8 + $0x720] ss:$24 sps:$4 sm:$0xff]  }
  0x82   :  { %2105 = vmatpush2.bf16.msra.mxu1 %v3488_v45 }
  0x83   :  { %2138 = vmatpush1.bf16.msra.mxu0 %v3473_v43  ;;  %2106 = vmatprep.subr.bf16.mxu1 %v3489_v46 }
  0x84   :  { %2139 = vmatprep.subr.bf16.mxu0 %v3481_v44 }
  0x86   :  { %2107 = vmatpush2.bf16.msra.mxu1 %v3494_v49  ;;  %v148_v49 = vrot.slane %v4159_v14, %v147_v40 }
  0x87   :  { %2140 = vmatpush1.bf16.msra.mxu0 %v3479_v47  ;;  %2108 = vmatprep.subr.bf16.mxu1 %v3495_v50  ;;  %v3531_v47 = vld [vmem:[#allocation8 + $0x6f0] ss:$24 sps:$4 sm:$0xff]   ;;  %v3539_v50 = vld [vmem:[#allocation8 + $0x6c4] ss:$24 sps:$4 sm:$0xff]  }
  0x88   :  { %2141 = vmatprep.subr.bf16.mxu0 %v3487_v48  ;;  %v3534_v48 = vld [vmem:[#allocation8 + $0x158] ss:$24 sps:$4 sm:$0xff]  }
  0x8a   :  { %2109 = vmatpush2.bf16.msra.mxu1 %v3500_v53 }
  0x8b   :  { %2142 = vmatpush2.bf16.msra.mxu0 %v3485_v51  ;;  %2110 = vmatprep.subr.bf16.mxu1 %v3501_v54  ;;  %v3537_v54 = vld [vmem:[#allocation8 + $0x6c0] ss:$24 sps:$4 sm:$0xff]  }
  0x8c   :  { %2143 = vmatprep.subr.bf16.mxu0 %v3493_v52  ;;  %v3542_v52 = vld [vmem:[#allocation8 + $0x12c] ss:$24 sps:$4 sm:$0xff]  }
  0x8e   :  { %2111 = vmatpush2.bf16.msra.mxu1 %v3506_v57  ;;  %v3545_v57 = vld [vmem:[#allocation8 + $0x694] ss:$24 sps:$4 sm:$0xff]  }
  0x8f   :  { %2144 = vmatpush2.bf16.msra.mxu0 %v3491_v55  ;;  %2112 = vmatprep.subr.bf16.mxu1 %v3507_v61  ;;  %v3540_v55 = vld [vmem:[#allocation8 + $0x128] ss:$24 sps:$4 sm:$0xff]  }
  0x90   :  { %2145 = vmatprep.subr.bf16.mxu0 %v3499_v56 }
  0x92   :  { %2113 = vmatpush2.bf16.msra.mxu1 %v3512_v0 }
  0x93   :  { %2146 = vmatpush2.bf16.msra.mxu0 %v3497_v58  ;;  %2114 = vmatprep.subr.bf16.mxu1 %v3513_v1  ;;  %v3548_v58 = vld [vmem:[#allocation8 + $0xfc] ss:$24 sps:$4 sm:$0xff]  }
  0x94   :  { %2147 = vmatprep.subr.bf16.mxu0 %v3505_v59  ;;  %v3551_v1 = vld [vmem:[#allocation8 + $0x664] ss:$24 sps:$4 sm:$0xff]  }
  0x96   :  { %2115 = vmatpush2.bf16.msra.mxu1 %v3518_v4  ;;  %v3552_v4 = vld [vmem:[#allocation8 + $0xc8] ss:$24 sps:$4 sm:$0xff]  }
  0x97   :  { %2148 = vmatpush2.bf16.msra.mxu0 %v3503_v60  ;;  %2166 = vmatprep.subr.bf16.mxu1 %v3524_v6  ;;  %v3560_v6 = vld [vmem:[#allocation8 + $0x9c] ss:$24 sps:$4 sm:$0xff]  }
  0x98   :  { %2149 = vmatprep.subr.bf16.mxu0 %v3511_v62  ;;  %v3543_v62 = vld [vmem:[#allocation8 + $0x690] ss:$24 sps:$4 sm:$0xff]  }
  0x9b   :  { %2150 = vmatpush2.bf16.msra.mxu0 %v3509_v63  ;;  %v3546_v63 = vld [vmem:[#allocation8 + $0xf8] ss:$24 sps:$4 sm:$0xff]  }
  0x9c   :  { %2151 = vmatprep.subr.bf16.mxu0 %v3517_v2  ;;  %v3554_v2 = vld [vmem:[#allocation8 + $0xcc] ss:$24 sps:$4 sm:$0xff]  }
  0x9f   :  { %2152 = vmatpush2.bf16.msra.mxu0 %v3515_v3  ;;  %v3549_v3 = vld [vmem:[#allocation8 + $0x660] ss:$24 sps:$4 sm:$0xff]  }
  0xa0   :  { %2153 = vmatprep.subr.bf16.mxu0 %v3521_v5  ;;  %v3557_v5 = vld [vmem:[#allocation8 + $0x634] ss:$24 sps:$4 sm:$0xff]  }
  0xa3   :  { %2154 = vmatpush2.bf16.msra.mxu0 %v3519_v7  ;;  %v3555_v7 = vld [vmem:[#allocation8 + $0x630] ss:$24 sps:$4 sm:$0xff]  }
  0xa4   :  { %2155 = vmatprep.subr.bf16.mxu0 %v3527_v8  ;;  %v3558_v8 = vld [vmem:[#allocation8 + $0x98] ss:$24 sps:$4 sm:$0xff]  }
  0xa7   :  { %2156 = vmatpush2.bf16.msra.mxu0 %v3525_v9  ;;  %v3563_v9 = vld [vmem:[#allocation8 + $0x604] ss:$24 sps:$4 sm:$0xff]  }
  0xa8   :  { %2207 = vmatprep.subr.bf16.mxu0 %v3536_v10  ;;  %v3566_v10 = vld [vmem:[#allocation8 + $0x6c] ss:$24 sps:$4 sm:$0xff]  }
 0x11a   :  { %v223_v18 = vpop.f32.mrf.mxu0 }
 0x11b   :  { %v224_v19 = vadd.f32 %v223_v18, %v128_v16  ;;  %v3564_v16 = vld [vmem:[#allocation8 + $0x68] ss:$24 sps:$4 sm:$0xff]   ;;  %v3572_v18 = vld [vmem:[#allocation8 + $0x3c] ss:$24 sps:$4 sm:$0xff]  }
 0x11c   :  { %v225_v21 = vpop.f32.mrf.mxu0 }
 0x11d   :  { %v226_v22 = vadd.f32 %v225_v21, %v132_v17  ;;  %v312_v24 = vmax.f32 %v224_v19, 0.0  ;;  %v3569_v17 = vld [vmem:[#allocation8 + $0x8d4] ss:$24 sps:$4 sm:$0xff]   ;;  %v3567_v19 = vld [vmem:[#allocation8 + $0x8d0] ss:$24 sps:$4 sm:$0xff]  }
 0x11e   :  { %v227_v25 = vpop.f32.mrf.mxu0  ;;  %v3570_v21 = vld [vmem:[#allocation8 + $0x38] ss:$24 sps:$4 sm:$0xff]  }
 0x11f   :  { %v313_v26 = vmax.f32 %v226_v22, 0.0  ;;  %v4178_v32 = vpack.c.bf16 %v312_v24, %v312_v24  ;;  %v3575_v22 = vld [vmem:[#allocation8 + $0x8a4] ss:$24 sps:$4 sm:$0xff]   ;;  %v3573_v25 = vld [vmem:[#allocation8 + $0x8a0] ss:$24 sps:$4 sm:$0xff]  }
 0x120   :  { %v228_v28 = vpop.f32.mrf.mxu0  ;;  %v3578_v24 = vld [vmem:[#allocation8 + $0xc] ss:$24 sps:$4 sm:$0xff]  }
 0x121   :  { %v4173_v29 = vpack.c.bf16 %v313_v26, %v313_v26  ;;  %v3576_v26 = vld [vmem:[#allocation8 + $0x8] ss:$24 sps:$4 sm:$0xff]   ;;  %v3584_v28 = vld [vmem:[#allocation8 + $0x2dc] ss:$24 sps:$4 sm:$0xff]  }
 0x122   :  { %v264_v33 = vpop.f32.mrf.mxu0 }
 0x123   :  { %v265_v35 = vadd.f32 %v264_v33, %v136_v27  ;;  %2116 = vmatprep.mubr.bf16.mxu1 %v4173_v29  ;;  %v3581_v27 = vld [vmem:[#allocation8 + $0x874] ss:$24 sps:$4 sm:$0xff]   ;;  %v3587_v33 = vld [vmem:[#allocation8 + $0x844] ss:$24 sps:$4 sm:$0xff]  }
 0x124   :  { %v266_v36 = vpop.f32.mrf.mxu0  ;;  %2117 = vmatmul.mubr.bf16.vlgmr.msra.gmra.mxu1 %v4178_v32 }
 0x125   :  { %v314_v37 = vmax.f32 %v265_v35, 0.0  ;;  %v267_v38 = vadd.f32 %v266_v36, %v140_v31  ;;  %2167 = vmatpush1.bf16.msra.mxu1 %v3522_v30  ;;  %v3579_v30 = vld [vmem:[#allocation8 + $0x870] ss:$24 sps:$4 sm:$0xff]   ;;  %v3585_v35 = vld [vmem:[#allocation8 + $0x840] ss:$24 sps:$4 sm:$0xff]  }
 0x126   :  { %2168 = vmatprep.subr.bf16.mxu1 %v3530_v34  ;;  %v268_v42 = vpop.f32.mrf.mxu0  ;;  %v3582_v31 = vld [vmem:[#allocation8 + $0x2d8] ss:$24 sps:$4 sm:$0xff]   ;;  %v3590_v34 = vld [vmem:[#allocation8 + $0x2ac] ss:$24 sps:$4 sm:$0xff]   ;;  %v3588_v36 = vld [vmem:[#allocation8 + $0x2a8] ss:$24 sps:$4 sm:$0xff]  }
 0x127   :  { %v315_v43 = vmax.f32 %v267_v38, 0.0  ;;  %v4183_v44 = vpack.c.bf16 %v314_v37, %v314_v37  ;;  %v3593_v37 = vld [vmem:[#allocation8 + $0x814] ss:$24 sps:$4 sm:$0xff]   ;;  %v143_v42 = vsub.s32 4, %v4156_v12 }
 0x128   :  { %v269_v45 = vpop.f32.mrf.mxu0  ;;  %v3596_v38 = vld [vmem:[#allocation8 + $0x27c] ss:$24 sps:$4 sm:$0xff]  }
 0x129   :  { %v4185_v46 = vpack.c.bf16 %v315_v43, %v315_v43  ;;  %2169 = vmatpush1.bf16.msra.mxu1 %v3528_v39  ;;  %v3591_v39 = vld [vmem:[#allocation8 + $0x810] ss:$24 sps:$4 sm:$0xff]   ;;  %v3599_v43 = vld [vmem:[#allocation8 + $0x7e4] ss:$24 sps:$4 sm:$0xff]  }
 0x12a   :  { %2170 = vmatprep.subr.bf16.mxu1 %v3533_v41  ;;  %v4190_v51 = vpop.f32.mrf.mxu0  ;;  %v3594_v41 = vld [vmem:[#allocation8 + $0x278] ss:$24 sps:$4 sm:$0xff]   ;;  %v3602_v45 = vld [vmem:[#allocation8 + $0x24c] ss:$24 sps:$4 sm:$0xff]  }
 0x12b   :  { %2157 = vmatprep.mubr.bf16.mxu0 %v4185_v46 }
 0x12c   :  { %2158 = vmatmul.mubr.bf16.vlgmr.msra.gmra.mxu0 %v4183_v44  ;;  %v307_v53 = vpop.f32.mrf.mxu0 }
 0x12d   :  { %2171 = vmatpush1.bf16.msra.mxu1 %v3531_v47  ;;  %2208 = vmatpush1.bf16.msra.mxu0 %v3534_v48  ;;  %v308_v56 = vadd.f32 %v307_v53, %v148_v49  ;;  %v3597_v47 = vld [vmem:[#allocation8 + $0x7e0] ss:$24 sps:$4 sm:$0xff]   ;;  %v144_v49 = vrot.slane %v4159_v14, %v143_v42  ;;  %v3603_v53 = vld [vmem:[#allocation8 + $0x7b0] ss:$24 sps:$4 sm:$0xff]   ;;  %v3617_v14 = vld [vmem:[#allocation8 + $0x1bc] ss:$24 sps:$4 sm:$0xff]  }
 0x12e   :  { %2239 = vmatprep.mubr.bf16.mxu0 %v4173_v29  ;;  %2172 = vmatprep.subr.bf16.mxu1 %v3539_v50  ;;  %v309_v59 = vpop.f32.mrf.mxu0  ;;  %v3600_v48 = vld [vmem:[#allocation8 + $0x248] ss:$24 sps:$4 sm:$0xff]   ;;  %v3605_v50 = vld [vmem:[#allocation8 + $0x7b4] ss:$24 sps:$4 sm:$0xff]  }
 0x12f   :  { %2209 = vmatprep.subr.bf16.mxu0 %v3542_v52  ;;  %v317_v60 = vmax.f32 %v308_v56, 0.0  ;;  %v3608_v52 = vld [vmem:[#allocation8 + $0x21c] ss:$24 sps:$4 sm:$0xff]   ;;  %v3612_v59 = vld [vmem:[#allocation8 + $0x1e8] ss:$24 sps:$4 sm:$0xff]  }
 0x130   :  { %v310_v61 = vpop.f32.mrf.mxu0  ;;  %v3611_v56 = vld [vmem:[#allocation8 + $0x784] ss:$24 sps:$4 sm:$0xff]  }
 0x131   :  { %2173 = vmatpush1.bf16.msra.mxu1 %v3537_v54  ;;  %2210 = vmatpush1.bf16.msra.mxu0 %v3540_v55  ;;  %v4195_v0 = vpack.c.bf16 %v317_v60, %v317_v60  ;;  %v3606_v54 = vld [vmem:[#allocation8 + $0x218] ss:$24 sps:$4 sm:$0xff]   ;;  %v306_v55 = vadd.f32 %v4190_v51, %v144_v49  ;;  %v3620_v61 = vld [vmem:[#allocation8 + $0x45c] ss:$24 sps:$4 sm:$0xff]   ;;  %v3623_v51 = vld [vmem:[#allocation8 + $0x18c] ss:$24 sps:$4 sm:$0xff]  }
 0x132   :  { %2174 = vmatprep.subr.bf16.mxu1 %v3545_v57  ;;  %2211 = vmatprep.subr.bf16.mxu0 %v3548_v58  ;;  %v3614_v57 = vld [vmem:[#allocation8 + $0x1ec] ss:$24 sps:$4 sm:$0xff]   ;;  %v3609_v58 = vld [vmem:[#allocation8 + $0x780] ss:$24 sps:$4 sm:$0xff]   ;;  %v3677_v49 = vld [vmem:[#allocation8 + $0x57c] ss:$24 sps:$4 sm:$0xff]  }
 0x133   :  { %2198 = vmatprep.mubr.bf16.mxu1 %v4195_v0  ;;  %v316_v60 = vmax.f32 %v306_v55, 0.0  ;;  %v3686_v55 = vld [vmem:[#allocation8 + $0x8ac] ss:$24 sps:$4 sm:$0xff]  }
 0x135   :  { %2175 = vmatpush1.bf16.msra.mxu1 %v3543_v62  ;;  %2212 = vmatpush1.bf16.msra.mxu0 %v3546_v63  ;;  %v3615_v62 = vld [vmem:[#allocation8 + $0x1b8] ss:$24 sps:$4 sm:$0xff]  }
 0x136   :  { %2176 = vmatprep.subr.bf16.mxu1 %v3551_v1  ;;  %2213 = vmatprep.subr.bf16.mxu0 %v3554_v2  ;;  %v3618_v63 = vld [vmem:[#allocation8 + $0x458] ss:$24 sps:$4 sm:$0xff]   ;;  %v4203_v1 = vpack.c.bf16 %v316_v60, %v316_v60  ;;  %v3626_v2 = vld [vmem:[#allocation8 + $0x42c] ss:$24 sps:$4 sm:$0xff]  }
 0x137   :  { %v3687_v60 = vld [vmem:[#allocation8 + $0x518] ss:$24 sps:$4 sm:$0xff]  }
 0x139   :  { %2177 = vmatpush1.bf16.msra.mxu1 %v3549_v3  ;;  %2214 = vmatpush1.bf16.msra.mxu0 %v3552_v4  ;;  %v3621_v3 = vld [vmem:[#allocation8 + $0x188] ss:$24 sps:$4 sm:$0xff]  }
 0x13a   :  { %2178 = vmatprep.subr.bf16.mxu1 %v3557_v5  ;;  %2215 = vmatprep.subr.bf16.mxu0 %v3560_v6  ;;  %v3624_v4 = vld [vmem:[#allocation8 + $0x428] ss:$24 sps:$4 sm:$0xff]   ;;  %v3629_v5 = vld [vmem:[#allocation8 + $0x3fc] ss:$24 sps:$4 sm:$0xff]  }
 0x13b   :  { %v3632_v6 = vld [vmem:[#allocation8 + $0x75c] ss:$24 sps:$4 sm:$0xff]  }
 0x13d   :  { %2179 = vmatpush1.bf16.msra.mxu1 %v3555_v7  ;;  %2216 = vmatpush1.bf16.msra.mxu0 %v3558_v8  ;;  %v3627_v7 = vld [vmem:[#allocation8 + $0x3f8] ss:$24 sps:$4 sm:$0xff]  }
 0x13e   :  { %2180 = vmatprep.subr.bf16.mxu1 %v3563_v9  ;;  %2217 = vmatprep.subr.bf16.mxu0 %v3566_v10  ;;  %v3630_v8 = vld [vmem:[#allocation8 + $0x758] ss:$24 sps:$4 sm:$0xff]   ;;  %v3635_v9 = vld [vmem:[#allocation8 + $0x3cc] ss:$24 sps:$4 sm:$0xff]  }
 0x13f   :  { %v3638_v10 = vld [vmem:[#allocation8 + $0x72c] ss:$24 sps:$4 sm:$0xff]  }
 0x141   :  { %2181 = vmatpush1.bf16.msra.mxu1 %v3561_v11  ;;  %2218 = vmatpush1.bf16.msra.mxu0 %v3564_v16  ;;  %v3633_v11 = vld [vmem:[#allocation8 + $0x3c8] ss:$24 sps:$4 sm:$0xff]  }
 0x142   :  { %2182 = vmatprep.subr.bf16.mxu1 %v3569_v17  ;;  %2219 = vmatprep.subr.bf16.mxu0 %v3572_v18  ;;  %v3636_v16 = vld [vmem:[#allocation8 + $0x728] ss:$24 sps:$4 sm:$0xff]   ;;  %v3641_v17 = vld [vmem:[#allocation8 + $0x39c] ss:$24 sps:$4 sm:$0xff]  }
 0x143   :  { %v3644_v18 = vld [vmem:[#allocation8 + $0x6fc] ss:$24 sps:$4 sm:$0xff]  }
 0x145   :  { %2183 = vmatpush2.bf16.msra.mxu1 %v3567_v19  ;;  %2220 = vmatpush1.bf16.msra.mxu0 %v3570_v21  ;;  %v3639_v19 = vld [vmem:[#allocation8 + $0x398] ss:$24 sps:$4 sm:$0xff]  }
 0x146   :  { %2184 = vmatprep.subr.bf16.mxu1 %v3575_v22  ;;  %2221 = vmatprep.subr.bf16.mxu0 %v3578_v24  ;;  %v3642_v21 = vld [vmem:[#allocation8 + $0x6f8] ss:$24 sps:$4 sm:$0xff]   ;;  %v3647_v22 = vld [vmem:[#allocation8 + $0x36c] ss:$24 sps:$4 sm:$0xff]  }
 0x147   :  { %v3650_v24 = vld [vmem:[#allocation8 + $0x6cc] ss:$24 sps:$4 sm:$0xff]  }
 0x149   :  { %2185 = vmatpush2.bf16.msra.mxu1 %v3573_v25  ;;  %2222 = vmatpush1.bf16.msra.mxu0 %v3576_v26  ;;  %v3645_v25 = vld [vmem:[#allocation8 + $0x368] ss:$24 sps:$4 sm:$0xff]  }
 0x14a   :  { %2186 = vmatprep.subr.bf16.mxu1 %v3581_v27  ;;  %2223 = vmatprep.subr.bf16.mxu0 %v3584_v28  ;;  %v3648_v26 = vld [vmem:[#allocation8 + $0x6c8] ss:$24 sps:$4 sm:$0xff]   ;;  %v3653_v27 = vld [vmem:[#allocation8 + $0x33c] ss:$24 sps:$4 sm:$0xff]  }
 0x14b   :  { %v3656_v28 = vld [vmem:[#allocation8 + $0x69c] ss:$24 sps:$4 sm:$0xff]  }
 0x14d   :  { %2187 = vmatpush2.bf16.msra.mxu1 %v3579_v30  ;;  %2224 = vmatpush2.bf16.msra.mxu0 %v3582_v31  ;;  %v3651_v30 = vld [vmem:[#allocation8 + $0x338] ss:$24 sps:$4 sm:$0xff]  }
 0x14e   :  { %2188 = vmatprep.subr.bf16.mxu1 %v3587_v33  ;;  %2225 = vmatprep.subr.bf16.mxu0 %v3590_v34  ;;  %v3654_v31 = vld [vmem:[#allocation8 + $0x698] ss:$24 sps:$4 sm:$0xff]   ;;  %v3659_v33 = vld [vmem:[#allocation8 + $0x30c] ss:$24 sps:$4 sm:$0xff]  }
 0x14f   :  { %v3662_v34 = vld [vmem:[#allocation8 + $0x66c] ss:$24 sps:$4 sm:$0xff]  }
 0x151   :  { %2189 = vmatpush2.bf16.msra.mxu1 %v3585_v35  ;;  %2226 = vmatpush2.bf16.msra.mxu0 %v3588_v36  ;;  %v3657_v35 = vld [vmem:[#allocation8 + $0x308] ss:$24 sps:$4 sm:$0xff]  }
 0x152   :  { %2190 = vmatprep.subr.bf16.mxu1 %v3593_v37  ;;  %2227 = vmatprep.subr.bf16.mxu0 %v3596_v38  ;;  %v3660_v36 = vld [vmem:[#allocation8 + $0x668] ss:$24 sps:$4 sm:$0xff]   ;;  %v3665_v37 = vld [vmem:[#allocation8 + $0x5dc] ss:$24 sps:$4 sm:$0xff]  }
 0x153   :  { %v3668_v38 = vld [vmem:[#allocation8 + $0x63c] ss:$24 sps:$4 sm:$0xff]  }
 0x155   :  { %2191 = vmatpush2.bf16.msra.mxu1 %v3591_v39  ;;  %2228 = vmatpush2.bf16.msra.mxu0 %v3594_v41  ;;  %v3663_v39 = vld [vmem:[#allocation8 + $0x5d8] ss:$24 sps:$4 sm:$0xff]  }
 0x156   :  { %2192 = vmatprep.subr.bf16.mxu1 %v3599_v43  ;;  %2229 = vmatprep.subr.bf16.mxu0 %v3602_v45  ;;  %v3666_v41 = vld [vmem:[#allocation8 + $0x638] ss:$24 sps:$4 sm:$0xff]   ;;  %v3671_v43 = vld [vmem:[#allocation8 + $0x5ac] ss:$24 sps:$4 sm:$0xff]  }
 0x157   :  { %v3674_v45 = vld [vmem:[#allocation8 + $0x60c] ss:$24 sps:$4 sm:$0xff]  }
 0x159   :  { %2193 = vmatpush2.bf16.msra.mxu1 %v3597_v47  ;;  %2230 = vmatpush2.bf16.msra.mxu0 %v3600_v48  ;;  %v3669_v47 = vld [vmem:[#allocation8 + $0x5a8] ss:$24 sps:$4 sm:$0xff]  }
 0x15a   :  { %2194 = vmatprep.subr.bf16.mxu1 %v3605_v50  ;;  %2231 = vmatprep.subr.bf16.mxu0 %v3608_v52  ;;  %v3672_v48 = vld [vmem:[#allocation8 + $0x608] ss:$24 sps:$4 sm:$0xff]   ;;  %v3680_v50 = vld [vmem:[#allocation8 + $0x8dc] ss:$24 sps:$4 sm:$0xff]   ;;  %v3675_v52 = vld [vmem:[#allocation8 + $0x578] ss:$24 sps:$4 sm:$0xff]  }
 0x15d   :  { %2195 = vmatpush2.bf16.msra.mxu1 %v3603_v53  ;;  %2232 = vmatpush2.bf16.msra.mxu0 %v3606_v54  ;;  %v3678_v53 = vld [vmem:[#allocation8 + $0x8d8] ss:$24 sps:$4 sm:$0xff]   ;;  %v3683_v54 = vld [vmem:[#allocation8 + $0x54c] ss:$24 sps:$4 sm:$0xff]  }
 0x15e   :  { %2196 = vmatprep.subr.bf16.mxu1 %v3611_v56  ;;  %2233 = vmatprep.subr.bf16.mxu0 %v3614_v57  ;;  %v3681_v56 = vld [vmem:[#allocation8 + $0x548] ss:$24 sps:$4 sm:$0xff]  }
 0x15f   :  { %v3684_v57 = vld [vmem:[#allocation8 + $0x8a8] ss:$24 sps:$4 sm:$0xff]  }
 0x161   :  { %2197 = vmatpush2.bf16.msra.mxu1 %v3609_v58  ;;  %2234 = vmatpush2.bf16.msra.mxu0 %v3612_v59  ;;  %v3689_v58 = vld [vmem:[#allocation8 + $0x51c] ss:$24 sps:$4 sm:$0xff]  }
 0x162   :  { %2235 = vmatprep.subr.bf16.mxu0 %v3617_v14  ;;  %2248 = vmatprep.subr.bf16.mxu1 %v3620_v61  ;;  %v3692_v59 = vld [vmem:[#allocation8 + $0x87c] ss:$24 sps:$4 sm:$0xff]   ;;  %v3690_v14 = vld [vmem:[#allocation8 + $0x878] ss:$24 sps:$4 sm:$0xff]   ;;  %v3695_v61 = vld [vmem:[#allocation8 + $0x4ec] ss:$24 sps:$4 sm:$0xff]  }
 0x164   :  { %2199 = vmatmul.mubr.bf16.vlgmr.msra.gmra.mxu1 %v4203_v1 }
 0x165   :  { %2236 = vmatpush2.bf16.msra.mxu0 %v3615_v62  ;;  %2249 = vmatpush1.bf16.msra.mxu1 %v3618_v63  ;;  %v3698_v62 = vld [vmem:[#allocation8 + $0x84c] ss:$24 sps:$4 sm:$0xff]   ;;  %v3693_v63 = vld [vmem:[#allocation8 + $0x4e8] ss:$24 sps:$4 sm:$0xff]  }
 0x166   :  { %2280 = vmatprep.mubr.bf16.mxu1 %v4185_v46  ;;  %2237 = vmatprep.subr.bf16.mxu0 %v3623_v51  ;;  %v3696_v51 = vld [vmem:[#allocation8 + $0x848] ss:$24 sps:$4 sm:$0xff]  }
 0x167   :  { %2250 = vmatprep.subr.bf16.mxu1 %v3626_v2  ;;  %v3701_v2 = vld [vmem:[#allocation8 + $0x4bc] ss:$24 sps:$4 sm:$0xff]  }
 0x169   :  { %2238 = vmatpush2.bf16.msra.mxu0 %v3621_v3  ;;  %2251 = vmatpush1.bf16.msra.mxu1 %v3624_v4  ;;  %v3704_v3 = vld [vmem:[#allocation8 + $0x81c] ss:$24 sps:$4 sm:$0xff]   ;;  %v3699_v4 = vld [vmem:[#allocation8 + $0x4b8] ss:$24 sps:$4 sm:$0xff]  }
 0x16a   :  { %2252 = vmatprep.subr.bf16.mxu1 %v3629_v5  ;;  %2289 = vmatprep.subr.bf16.mxu0 %v3632_v6  ;;  %v3702_v5 = vld [vmem:[#allocation8 + $0x818] ss:$24 sps:$4 sm:$0xff]   ;;  %v3707_v6 = vld [vmem:[#allocation8 + $0x48c] ss:$24 sps:$4 sm:$0xff]  }
 0x16c   :  { %2240 = vmatmul.mubr.bf16.vlgmr.msra.gmra.mxu0 %v4178_v32 }
 0x16d   :  { %2253 = vmatpush1.bf16.msra.mxu1 %v3627_v7  ;;  %2290 = vmatpush1.bf16.msra.mxu0 %v3630_v8  ;;  %v3710_v7 = vld [vmem:[#allocation8 + $0x7ec] ss:$24 sps:$4 sm:$0xff]   ;;  %v3705_v8 = vld [vmem:[#allocation8 + $0x488] ss:$24 sps:$4 sm:$0xff]  }
 0x16e   :  { %2321 = vmatprep.mubr.bf16.mxu0 %v4195_v0  ;;  %2254 = vmatprep.subr.bf16.mxu1 %v3635_v9  ;;  %v3708_v9 = vld [vmem:[#allocation8 + $0x7e8] ss:$24 sps:$4 sm:$0xff]  }
 0x16f   :  { %2291 = vmatprep.subr.bf16.mxu0 %v3638_v10  ;;  %v3713_v10 = vld [vmem:[#allocation8 + $0x7bc] ss:$24 sps:$4 sm:$0xff]  }
 0x171   :  { %2255 = vmatpush1.bf16.msra.mxu1 %v3633_v11  ;;  %2292 = vmatpush1.bf16.msra.mxu0 %v3636_v16  ;;  %v3716_v11 = vld [vmem:[#allocation8 + $0x164] ss:$24 sps:$4 sm:$0xff]   ;;  %v3711_v16 = vld [vmem:[#allocation8 + $0x7b8] ss:$24 sps:$4 sm:$0xff]  }
 0x172   :  { %2256 = vmatprep.subr.bf16.mxu1 %v3641_v17  ;;  %2293 = vmatprep.subr.bf16.mxu0 %v3644_v18  ;;  %v3714_v17 = vld [vmem:[#allocation8 + $0x160] ss:$24 sps:$4 sm:$0xff]   ;;  %v3719_v18 = vld [vmem:[#allocation8 + $0x78c] ss:$24 sps:$4 sm:$0xff]  }
 0x175   :  { %2257 = vmatpush1.bf16.msra.mxu1 %v3639_v19  ;;  %2294 = vmatpush1.bf16.msra.mxu0 %v3642_v21  ;;  %v3722_v19 = vld [vmem:[#allocation8 + $0x134] ss:$24 sps:$4 sm:$0xff]   ;;  %v3717_v21 = vld [vmem:[#allocation8 + $0x788] ss:$24 sps:$4 sm:$0xff]  }
 0x176   :  { %2258 = vmatprep.subr.bf16.mxu1 %v3647_v22  ;;  %2295 = vmatprep.subr.bf16.mxu0 %v3650_v24  ;;  %v3720_v22 = vld [vmem:[#allocation8 + $0x130] ss:$24 sps:$4 sm:$0xff]   ;;  %v3725_v24 = vld [vmem:[#allocation8 + $0x104] ss:$24 sps:$4 sm:$0xff]  }
 0x179   :  { %2259 = vmatpush1.bf16.msra.mxu1 %v3645_v25  ;;  %2296 = vmatpush1.bf16.msra.mxu0 %v3648_v26  ;;  %v3728_v25 = vld [vmem:[#allocation8 + $0x464] ss:$24 sps:$4 sm:$0xff]   ;;  %v3723_v26 = vld [vmem:[#allocation8 + $0x100] ss:$24 sps:$4 sm:$0xff]  }
 0x17a   :  { %2260 = vmatprep.subr.bf16.mxu1 %v3653_v27  ;;  %2297 = vmatprep.subr.bf16.mxu0 %v3656_v28  ;;  %v3726_v27 = vld [vmem:[#allocation8 + $0x460] ss:$24 sps:$4 sm:$0xff]   ;;  %v3731_v28 = vld [vmem:[#allocation8 + $0xd4] ss:$24 sps:$4 sm:$0xff]  }
 0x17d   :  { %2261 = vmatpush1.bf16.msra.mxu1 %v3651_v30  ;;  %2298 = vmatpush1.bf16.msra.mxu0 %v3654_v31  ;;  %v3734_v30 = vld [vmem:[#allocation8 + $0x434] ss:$24 sps:$4 sm:$0xff]   ;;  %v3729_v31 = vld [vmem:[#allocation8 + $0xd0] ss:$24 sps:$4 sm:$0xff]  }
 0x17e   :  { %2262 = vmatprep.subr.bf16.mxu1 %v3659_v33  ;;  %2299 = vmatprep.subr.bf16.mxu0 %v3662_v34  ;;  %v3732_v33 = vld [vmem:[#allocation8 + $0x430] ss:$24 sps:$4 sm:$0xff]   ;;  %v3740_v34 = vld [vmem:[#allocation8 + $0x404] ss:$24 sps:$4 sm:$0xff]  }
 0x181   :  { %2263 = vmatpush1.bf16.msra.mxu1 %v3657_v35  ;;  %2300 = vmatpush1.bf16.msra.mxu0 %v3660_v36  ;;  %v3735_v35 = vld [vmem:[#allocation8 + $0xa0] ss:$24 sps:$4 sm:$0xff]  }
 0x182   :  { %2264 = vmatprep.subr.bf16.mxu1 %v3665_v37  ;;  %2301 = vmatprep.subr.bf16.mxu0 %v3668_v38  ;;  %v3738_v36 = vld [vmem:[#allocation8 + $0x400] ss:$24 sps:$4 sm:$0xff]   ;;  %v3743_v37 = vld [vmem:[#allocation8 + $0x74] ss:$24 sps:$4 sm:$0xff]  }
 0x183   :  { %v3746_v38 = vld [vmem:[#allocation8 + $0x3d4] ss:$24 sps:$4 sm:$0xff]  }
 0x185   :  { %2265 = vmatpush2.bf16.msra.mxu1 %v3663_v39  ;;  %2302 = vmatpush1.bf16.msra.mxu0 %v3666_v41  ;;  %v3741_v39 = vld [vmem:[#allocation8 + $0x70] ss:$24 sps:$4 sm:$0xff]  }
 0x186   :  { %2266 = vmatprep.subr.bf16.mxu1 %v3671_v43  ;;  %2303 = vmatprep.subr.bf16.mxu0 %v3674_v45  ;;  %v3744_v41 = vld [vmem:[#allocation8 + $0x3d0] ss:$24 sps:$4 sm:$0xff]   ;;  %v3749_v43 = vld [vmem:[#allocation8 + $0x44] ss:$24 sps:$4 sm:$0xff]   ;;  %v3747_v45 = vld [vmem:[#allocation8 + $0x40] ss:$24 sps:$4 sm:$0xff]  }
 0x189   :  { %2267 = vmatpush2.bf16.msra.mxu1 %v3669_v47  ;;  %2304 = vmatpush1.bf16.msra.mxu0 %v3672_v48  ;;  %v3750_v47 = vld [vmem:[#allocation8 + $0x3a0] ss:$24 sps:$4 sm:$0xff]   ;;  %v3755_v48 = vld [vmem:[#allocation8 + $0x14] ss:$24 sps:$4 sm:$0xff]  }
 0x18a   :  { %2268 = vmatprep.subr.bf16.mxu1 %v3677_v49  ;;  %2305 = vmatprep.subr.bf16.mxu0 %v3680_v50  ;;  %v3758_v49 = vld [vmem:[#allocation8 + $0x374] ss:$24 sps:$4 sm:$0xff]   ;;  %v3753_v50 = vld [vmem:[#allocation8 + $0x10] ss:$24 sps:$4 sm:$0xff]  }
 0x18d   :  { %2269 = vmatpush2.bf16.msra.mxu1 %v3675_v52  ;;  %2306 = vmatpush2.bf16.msra.mxu0 %v3678_v53  ;;  %v3756_v52 = vld [vmem:[#allocation8 + $0x370] ss:$24 sps:$4 sm:$0xff]   ;;  %v3761_v53 = vld [vmem:[#allocation8 + $0x2e4] ss:$24 sps:$4 sm:$0xff]  }
 0x18e   :  { %2270 = vmatprep.subr.bf16.mxu1 %v3683_v54  ;;  %2307 = vmatprep.subr.bf16.mxu0 %v3686_v55  ;;  %v3764_v54 = vld [vmem:[#allocation8 + $0x344] ss:$24 sps:$4 sm:$0xff]   ;;  %v3759_v55 = vld [vmem:[#allocation8 + $0x2e0] ss:$24 sps:$4 sm:$0xff]  }
 0x191   :  { %2271 = vmatpush2.bf16.msra.mxu1 %v3681_v56  ;;  %2308 = vmatpush2.bf16.msra.mxu0 %v3684_v57  ;;  %v3762_v56 = vld [vmem:[#allocation8 + $0x340] ss:$24 sps:$4 sm:$0xff]   ;;  %v3767_v57 = vld [vmem:[#allocation8 + $0x2b4] ss:$24 sps:$4 sm:$0xff]  }
 0x192   :  { %2272 = vmatprep.subr.bf16.mxu1 %v3689_v58  ;;  %2309 = vmatprep.subr.bf16.mxu0 %v3692_v59  ;;  %v3770_v58 = vld [vmem:[#allocation8 + $0x314] ss:$24 sps:$4 sm:$0xff]   ;;  %v3765_v59 = vld [vmem:[#allocation8 + $0x2b0] ss:$24 sps:$4 sm:$0xff]  }
 0x195   :  { %2273 = vmatpush2.bf16.msra.mxu1 %v3687_v60  ;;  %2310 = vmatpush2.bf16.msra.mxu0 %v3690_v14  ;;  %v3768_v60 = vld [vmem:[#allocation8 + $0x310] ss:$24 sps:$4 sm:$0xff]   ;;  %v3773_v14 = vld [vmem:[#allocation8 + $0x284] ss:$24 sps:$4 sm:$0xff]  }
 0x196   :  { %2274 = vmatprep.subr.bf16.mxu1 %v3695_v61  ;;  %2311 = vmatprep.subr.bf16.mxu0 %v3698_v62  ;;  %v3776_v61 = vld [vmem:[#allocation8 + $0x5e4] ss:$24 sps:$4 sm:$0xff]   ;;  %v3771_v62 = vld [vmem:[#allocation8 + $0x280] ss:$24 sps:$4 sm:$0xff]  }
 0x199   :  { %2275 = vmatpush2.bf16.msra.mxu1 %v3693_v63  ;;  %2312 = vmatpush2.bf16.msra.mxu0 %v3696_v51  ;;  %v3774_v63 = vld [vmem:[#allocation8 + $0x5e0] ss:$24 sps:$4 sm:$0xff]   ;;  %v3779_v51 = vld [vmem:[#allocation8 + $0x254] ss:$24 sps:$4 sm:$0xff]  }
 0x19a   :  { %2276 = vmatprep.subr.bf16.mxu1 %v3701_v2  ;;  %2313 = vmatprep.subr.bf16.mxu0 %v3704_v3  ;;  %v3782_v2 = vld [vmem:[#allocation8 + $0x5b4] ss:$24 sps:$4 sm:$0xff]   ;;  %v3777_v3 = vld [vmem:[#allocation8 + $0x250] ss:$24 sps:$4 sm:$0xff]  }
 0x19d   :  { %2277 = vmatpush2.bf16.msra.mxu1 %v3699_v4  ;;  %2314 = vmatpush2.bf16.msra.mxu0 %v3702_v5  ;;  %v3780_v4 = vld [vmem:[#allocation8 + $0x5b0] ss:$24 sps:$4 sm:$0xff]   ;;  %v3785_v5 = vld [vmem:[#allocation8 + $0x224] ss:$24 sps:$4 sm:$0xff]  }
 0x19e   :  { %2278 = vmatprep.subr.bf16.mxu1 %v3707_v6  ;;  %2315 = vmatprep.subr.bf16.mxu0 %v3710_v7  ;;  %v3788_v6 = vld [vmem:[#allocation8 + $0x584] ss:$24 sps:$4 sm:$0xff]   ;;  %v3783_v7 = vld [vmem:[#allocation8 + $0x220] ss:$24 sps:$4 sm:$0xff]  }
 0x1a1   :  { %2279 = vmatpush2.bf16.msra.mxu1 %v3705_v8  ;;  %2316 = vmatpush2.bf16.msra.mxu0 %v3708_v9  ;;  %v3786_v8 = vld [vmem:[#allocation8 + $0x580] ss:$24 sps:$4 sm:$0xff]   ;;  %v3791_v9 = vld [vmem:[#allocation8 + $0x1f4] ss:$24 sps:$4 sm:$0xff]  }
 0x1a2   :  { %2317 = vmatprep.subr.bf16.mxu0 %v3713_v10  ;;  %2330 = vmatprep.subr.bf16.mxu1 %v3716_v11  ;;  %v3794_v10 = vld [vmem:[#allocation8 + $0x554] ss:$24 sps:$4 sm:$0xff]   ;;  %v3789_v11 = vld [vmem:[#allocation8 + $0x1f0] ss:$24 sps:$4 sm:$0xff]  }
 0x1a4   :  { %2281 = vmatmul.mubr.bf16.vlgmr.msra.gmra.mxu1 %v4183_v44 }
 0x1a5   :  { %2318 = vmatpush2.bf16.msra.mxu0 %v3711_v16  ;;  %2331 = vmatpush1.bf16.msra.mxu1 %v3714_v17  ;;  %v3792_v16 = vld [vmem:[#allocation8 + $0x550] ss:$24 sps:$4 sm:$0xff]   ;;  %v3797_v17 = vld [vmem:[#allocation8 + $0x1c4] ss:$24 sps:$4 sm:$0xff]  }
 0x1a6   :  { %2362 = vmatprep.mubr.bf16.mxu1 %v4173_v29  ;;  %2319 = vmatprep.subr.bf16.mxu0 %v3719_v18  ;;  %v3737_v29 = vld [vmem:[#allocation8 + $0xa4] ss:$24 sps:$4 sm:$0xff]  }
 0x1a7   :  { %2332 = vmatprep.subr.bf16.mxu1 %v3722_v19  ;;  %v3800_v18 = vld [vmem:[#allocation8 + $0x524] ss:$24 sps:$4 sm:$0xff]   ;;  %v3795_v19 = vld [vmem:[#allocation8 + $0x1c0] ss:$24 sps:$4 sm:$0xff]  }
 0x1a9   :  { %2320 = vmatpush2.bf16.msra.mxu0 %v3717_v21  ;;  %2333 = vmatpush1.bf16.msra.mxu1 %v3720_v22  ;;  %v3798_v21 = vld [vmem:[#allocation8 + $0x520] ss:$24 sps:$4 sm:$0xff]   ;;  %v3803_v22 = vld [vmem:[#allocation8 + $0x194] ss:$24 sps:$4 sm:$0xff]  }
 0x1aa   :  { %2334 = vmatprep.subr.bf16.mxu1 %v3725_v24  ;;  %2371 = vmatprep.subr.bf16.mxu0 %v3728_v25  ;;  %v3806_v24 = vld [vmem:[#allocation8 + $0x4f4] ss:$24 sps:$4 sm:$0xff]   ;;  %v3801_v25 = vld [vmem:[#allocation8 + $0x190] ss:$24 sps:$4 sm:$0xff]  }
 0x1ac   :  { %2322 = vmatmul.mubr.bf16.vlgmr.msra.gmra.mxu0 %v4203_v1 }
 0x1ad   :  { %2335 = vmatpush1.bf16.msra.mxu1 %v3723_v26  ;;  %2372 = vmatpush1.bf16.msra.mxu0 %v3726_v27  ;;  %v3804_v26 = vld [vmem:[#allocation8 + $0x4f0] ss:$24 sps:$4 sm:$0xff]   ;;  %v3809_v27 = vld [vmem:[#allocation8 + $0x4c4] ss:$24 sps:$4 sm:$0xff]  }
 0x1ae   :  { %2403 = vmatprep.mubr.bf16.mxu0 %v4185_v46  ;;  %2336 = vmatprep.subr.bf16.mxu1 %v3731_v28  ;;  %v3752_v46 = vld [vmem:[#allocation8 + $0x3a4] ss:$24 sps:$4 sm:$0xff]  }
 0x1af   :  { %2373 = vmatprep.subr.bf16.mxu0 %v3734_v30  ;;  %v3812_v28 = vld [vmem:[#allocation8 + $0x764] ss:$24 sps:$4 sm:$0xff]   ;;  %v3807_v30 = vld [vmem:[#allocation8 + $0x4c0] ss:$24 sps:$4 sm:$0xff]  }
 0x1b1   :  { %2337 = vmatpush1.bf16.msra.mxu1 %v3729_v31  ;;  %2374 = vmatpush1.bf16.msra.mxu0 %v3732_v33  ;;  %v3810_v31 = vld [vmem:[#allocation8 + $0x760] ss:$24 sps:$4 sm:$0xff]   ;;  %v3815_v33 = vld [vmem:[#allocation8 + $0x494] ss:$24 sps:$4 sm:$0xff]  }
 0x1b2   :  { %2338 = vmatprep.subr.bf16.mxu1 %v3737_v29  ;;  %2375 = vmatprep.subr.bf16.mxu0 %v3740_v34  ;;  %v3818_v29 = vld [vmem:[#allocation8 + $0x734] ss:$24 sps:$4 sm:$0xff]  }
 0x1b5   :  { %2339 = vmatpush1.bf16.msra.mxu1 %v3735_v35  ;;  %2376 = vmatpush1.bf16.msra.mxu0 %v3738_v36  ;;  %v3813_v35 = vld [vmem:[#allocation8 + $0x490] ss:$24 sps:$4 sm:$0xff]  }
 0x1b6   :  { %2340 = vmatprep.subr.bf16.mxu1 %v3743_v37  ;;  %2377 = vmatprep.subr.bf16.mxu0 %v3746_v38  ;;  %v3816_v36 = vld [vmem:[#allocation8 + $0x730] ss:$24 sps:$4 sm:$0xff]   ;;  %v3821_v38 = vld [vmem:[#allocation8 + $0x704] ss:$24 sps:$4 sm:$0xff]  }
 0x1b9   :  { %2341 = vmatpush1.bf16.msra.mxu1 %v3741_v39  ;;  %2378 = vmatpush1.bf16.msra.mxu0 %v3744_v41  ;;  %v3846_v39 = vld [vmem:[#allocation11 + $0x78] sm:$0xff]  }
 0x1ba   :  { %2342 = vmatprep.subr.bf16.mxu1 %v3749_v43  ;;  %2379 = vmatprep.subr.bf16.mxu0 %v3752_v46  ;;  %v3819_v43 = vld [vmem:[#allocation8 + $0x700] ss:$24 sps:$4 sm:$0xff]  }
 0x1bb   :  { %v3847_v46 = vld [vmem:[#allocation11 + $0x38] sm:$0xff]  }
 0x1bd   :  { %2343 = vmatpush1.bf16.msra.mxu1 %v3747_v45  ;;  %2380 = vmatpush1.bf16.msra.mxu0 %v3750_v47  ;;  %v3824_v45 = vld [vmem:[#allocation8 + $0x6d4] ss:$24 sps:$4 sm:$0xff]  }
 0x1be   :  { %2344 = vmatprep.subr.bf16.mxu1 %v3755_v48  ;;  %2381 = vmatprep.subr.bf16.mxu0 %v3758_v49  ;;  %v3851_v47 = vld [vmem:[#allocation11 + $0x70] sm:$0xff]  }
 0x1bf   :  { %v3852_v49 = vld [vmem:[#allocation11 + $0x30] sm:$0xff]  }
 0x1c1   :  { %2345 = vmatpush1.bf16.msra.mxu1 %v3753_v50  ;;  %2382 = vmatpush1.bf16.msra.mxu0 %v3756_v52  ;;  %v3827_v52 = vld [vmem:[#allocation8 + $0x6a4] ss:$24 sps:$4 sm:$0xff]  }
 0x1c2   :  { %2346 = vmatprep.subr.bf16.mxu1 %v3761_v53  ;;  %2383 = vmatprep.subr.bf16.mxu0 %v3764_v54  ;;  %v3856_v53 = vld [vmem:[#allocation11 + $0x68] sm:$0xff]  }
 0x1c5   :  { %2347 = vmatpush2.bf16.msra.mxu1 %v3759_v55  ;;  %2384 = vmatpush1.bf16.msra.mxu0 %v3762_v56  ;;  %v3825_v55 = vld [vmem:[#allocation8 + $0x6a0] ss:$24 sps:$4 sm:$0xff]   ;;  %v3857_v56 = vld [vmem:[#allocation11 + $0x28] sm:$0xff]  }
 0x1c6   :  { %2348 = vmatprep.subr.bf16.mxu1 %v3767_v57  ;;  %2385 = vmatprep.subr.bf16.mxu0 %v3770_v58  ;;  %v3830_v57 = vld [vmem:[#allocation8 + $0x674] ss:$24 sps:$4 sm:$0xff]  }
 0x1c7   :  { %v3861_v58 = vld [vmem:[#allocation11 + $0x60] sm:$0xff]  }
 0x1c9   :  { %2349 = vmatpush2.bf16.msra.mxu1 %v3765_v59  ;;  %2386 = vmatpush1.bf16.msra.mxu0 %v3768_v60  ;;  %v3828_v59 = vld [vmem:[#allocation8 + $0x670] ss:$24 sps:$4 sm:$0xff]  }
 0x1ca   :  { %2350 = vmatprep.subr.bf16.mxu1 %v3773_v14  ;;  %2387 = vmatprep.subr.bf16.mxu0 %v3776_v61  ;;  %v3862_v60 = vld [vmem:[#allocation11 + $0x20] sm:$0xff]   ;;  %v3866_v61 = vld [vmem:[#allocation11 + $0x58] sm:$0xff]  }
 0x1cb   :  { %v3833_v14 = vld [vmem:[#allocation8 + $0x644] ss:$24 sps:$4 sm:$0xff]  }
 0x1cd   :  { %2351 = vmatpush2.bf16.msra.mxu1 %v3771_v62  ;;  %2388 = vmatpush2.bf16.msra.mxu0 %v3774_v63  ;;  %v3831_v62 = vld [vmem:[#allocation8 + $0x640] ss:$24 sps:$4 sm:$0xff]  }
 0x1ce   :  { %2352 = vmatprep.subr.bf16.mxu1 %v3779_v51  ;;  %2389 = vmatprep.subr.bf16.mxu0 %v3782_v2  ;;  %v3867_v63 = vld [vmem:[#allocation11 + $0x18] sm:$0xff]   ;;  %v3836_v51 = vld [vmem:[#allocation8 + $0x614] ss:$24 sps:$4 sm:$0xff]  }
 0x1cf   :  { %v3871_v2 = vld [vmem:[#allocation11 + $0x50] sm:$0xff]  }
 0x1d1   :  { %2353 = vmatpush2.bf16.msra.mxu1 %v3777_v3  ;;  %2390 = vmatpush2.bf16.msra.mxu0 %v3780_v4  ;;  %v3834_v3 = vld [vmem:[#allocation8 + $0x610] ss:$24 sps:$4 sm:$0xff]   ;;  %v3872_v4 = vld [vmem:[#allocation11 + $0x10] sm:$0xff]  }
 0x1d2   :  { %2354 = vmatprep.subr.bf16.mxu1 %v3785_v5  ;;  %2391 = vmatprep.subr.bf16.mxu0 %v3788_v6  ;;  %v3839_v5 = vld [vmem:[#allocation8 + $0x8e4] ss:$24 sps:$4 sm:$0xff]   ;;  %v3873_v6 = vld [vmem:[#allocation11 + $0x48] sm:$0xff]  }
 0x1d5   :  { %2355 = vmatpush2.bf16.msra.mxu1 %v3783_v7  ;;  %2392 = vmatpush2.bf16.msra.mxu0 %v3786_v8  ;;  %v3837_v7 = vld [vmem:[#allocation8 + $0x8e0] ss:$24 sps:$4 sm:$0xff]   ;;  %v3874_v8 = vld [vmem:[#allocation11 + $0x8] sm:$0xff]  }
 0x1d6   :  { %2356 = vmatprep.subr.bf16.mxu1 %v3791_v9  ;;  %2393 = vmatprep.subr.bf16.mxu0 %v3794_v10  ;;  %v3842_v9 = vld [vmem:[#allocation8 + $0x8b4] ss:$24 sps:$4 sm:$0xff]  }
 0x1d7   :  { %v3875_v10 = vld [vmem:[#allocation11 + $0x40] sm:$0xff]  }
 0x1d9   :  { %2357 = vmatpush2.bf16.msra.mxu1 %v3789_v11  ;;  %2394 = vmatpush2.bf16.msra.mxu0 %v3792_v16  ;;  %v3840_v11 = vld [vmem:[#allocation8 + $0x8b0] ss:$24 sps:$4 sm:$0xff]  }
 0x1da   :  { %2358 = vmatprep.subr.bf16.mxu1 %v3797_v17  ;;  %2395 = vmatprep.subr.bf16.mxu0 %v3800_v18  ;;  %v3876_v16 = vld [vmem:[#allocation11] sm:$0xff]   ;;  %v3877_v18 = vld [vmem:[#allocation11 + $0xf8] sm:$0xff]  }
 0x1db   :  { %v3845_v17 = vld [vmem:[#allocation8 + $0x884] ss:$24 sps:$4 sm:$0xff]  }
 0x1dd   :  { %2359 = vmatpush2.bf16.msra.mxu1 %v3795_v19  ;;  %2396 = vmatpush2.bf16.msra.mxu0 %v3798_v21  ;;  %v3843_v19 = vld [vmem:[#allocation8 + $0x880] ss:$24 sps:$4 sm:$0xff]   ;;  %v3850_v21 = vld [vmem:[#allocation8 + $0x854] ss:$24 sps:$4 sm:$0xff]  }
 0x1de   :  { %2360 = vmatprep.subr.bf16.mxu1 %v3803_v22  ;;  %2397 = vmatprep.subr.bf16.mxu0 %v3806_v24  ;;  %v3848_v22 = vld [vmem:[#allocation8 + $0x850] ss:$24 sps:$4 sm:$0xff]   ;;  %v3855_v24 = vld [vmem:[#allocation8 + $0x824] ss:$24 sps:$4 sm:$0xff]  }
 0x1e1   :  { %2361 = vmatpush2.bf16.msra.mxu1 %v3801_v25  ;;  %2398 = vmatpush2.bf16.msra.mxu0 %v3804_v26  ;;  %v3853_v25 = vld [vmem:[#allocation8 + $0x820] ss:$24 sps:$4 sm:$0xff]   ;;  %v3860_v26 = vld [vmem:[#allocation8 + $0x7f4] ss:$24 sps:$4 sm:$0xff]  }
 0x1e2   :  { %2399 = vmatprep.subr.bf16.mxu0 %v3809_v27  ;;  %2412 = vmatprep.subr.bf16.mxu1 %v3812_v28  ;;  %v3858_v27 = vld [vmem:[#allocation8 + $0x7f0] ss:$24 sps:$4 sm:$0xff]   ;;  %v3865_v28 = vld [vmem:[#allocation8 + $0x7c4] ss:$24 sps:$4 sm:$0xff]  }
 0x1e4   :  { %2363 = vmatmul.mubr.bf16.vlgmr.msra.gmra.mxu1 %v4178_v32  ;;  %v4214_v34 = vpop.f32.mrf.mxu1 }
 0x1e5   :  { %2400 = vmatpush2.bf16.msra.mxu0 %v3807_v30  ;;  %2413 = vmatpush1.bf16.msra.mxu1 %v3810_v31  ;;  %v3863_v30 = vld [vmem:[#allocation8 + $0x7c0] ss:$24 sps:$4 sm:$0xff]  }
 0x1e6   :  { %2444 = vmatprep.mubr.bf16.mxu1 %v4195_v0  ;;  %v4217_v37 = vpop.f32.mrf.mxu1  ;;  %2401 = vmatprep.subr.bf16.mxu0 %v3815_v33  ;;  %v3822_v0 = vld [vmem:[#allocation8 + $0x6d0] ss:$24 sps:$4 sm:$0xff]   ;;  %v4224_v31 = vld [vmem:[#allocation10] sm:$0x3f]  ;;  %v3870_v33 = vld [vmem:[#allocation8 + $0x794] ss:$24 sps:$4 sm:$0xff]  }
 0x1e7   :  { %2414 = vmatprep.subr.bf16.mxu1 %v3818_v29  ;;  %v617_v29 = vrot.slane %v4224_v31, %v127_v13 }
 0x1e8   :  { %v2122_v41 = vpop.f32.mrf.mxu1 }
 0x1e9   :  { %2402 = vmatpush2.bf16.msra.mxu0 %v3813_v35  ;;  %2415 = vmatpush1.bf16.msra.mxu1 %v3816_v36  ;;  %v3868_v35 = vld [vmem:[#allocation8 + $0x790] ss:$24 sps:$4 sm:$0xff]   ;;  %v621_v36 = vrot.slane %v4224_v31, %v131_v15 }
 0x1ea   :  { %v2123_v32 = vpop.f32.mrf.mxu1  ;;  %2416 = vmatprep.subr.bf16.mxu1 %v3821_v38  ;;  %3341 = vmatprep.subr.bf16.mxu0 %v3846_v39  ;;  %v2119_v38 = vadd.f32 %v4214_v34, %v617_v29  ;;  %v3908_v29 = vld [vmem:[#allocation11 + $0x100] sm:$0xff]  }
 0x1eb   :  { %v2121_v39 = vadd.f32 %v4217_v37, %v621_v36  ;;  %v3879_v37 = vld [vmem:[#allocation11 + $0xf0] sm:$0xff]  }
 0x1ec   :  { %2404 = vmatmul.mubr.bf16.vlgmr.msra.gmra.mxu0 %v4183_v44  ;;  %v4220_v48 = vpop.f32.mrf.mxu0 }
 0x1ed   :  { %2417 = vmatpush1.bf16.msra.mxu1 %v3819_v43  ;;  %3342 = vmatpush3.bf16.msra.mxu0 %v3847_v46  ;;  %v2160_v41 = vadd.f32 %v4220_v48, %v2119_v38 }
 0x1ee   :  { %v4222_v50 = vpop.f32.mrf.mxu0  ;;  %2418 = vmatprep.subr.bf16.mxu1 %v3824_v45  ;;  %3343 = vmatprep.subr.bf16.mxu0 %v3851_v47 }
 0x1ef   :  { %v2162_v46 = vadd.f32 %v4222_v50, %v2121_v39 }
 0x1f0   :  { %v2163_v54 = vpop.f32.mrf.mxu0 }
 0x1f1   :  { %2419 = vmatpush1.bf16.msra.mxu1 %v3822_v0  ;;  %3344 = vmatpush3.bf16.msra.mxu0 %v3852_v49 }
 0x1f2   :  { %2420 = vmatprep.subr.bf16.mxu1 %v3827_v52  ;;  %3345 = vmatprep.subr.bf16.mxu0 %v3856_v53  ;;  %v2164_v44 = vpop.f32.mrf.mxu0  ;;  %v3878_v53 = vld [vmem:[#allocation11 + $0xb8] sm:$0xff]  }
 0x1f3   :  { %v3894_v44 = vld [vmem:[#allocation11 + $0x138] sm:$0xff]  }
 0x1f5   :  { %2421 = vmatpush1.bf16.msra.mxu1 %v3825_v55  ;;  %3346 = vmatpush3.bf16.msra.mxu0 %v3857_v56  ;;  %v3881_v55 = vld [vmem:[#allocation11 + $0xe8] sm:$0xff]  }
 0x1f6   :  { %2422 = vmatprep.subr.bf16.mxu1 %v3830_v57  ;;  %3347 = vmatprep.subr.bf16.mxu0 %v3861_v58  ;;  %v3893_v57 = vld [vmem:[#allocation11 + $0x178] sm:$0xff]   ;;  %v3895_v58 = vld [vmem:[#allocation11 + $0x170] sm:$0xff]  }
 0x1f9   :  { %2423 = vmatpush1.bf16.msra.mxu1 %v3828_v59  ;;  %3348 = vmatpush3.bf16.msra.mxu0 %v3862_v60  ;;  %v3882_v59 = vld [vmem:[#allocation11 + $0xa8] sm:$0xff]   ;;  %v3883_v60 = vld [vmem:[#allocation11 + $0xe0] sm:$0xff]  }
 0x1fa   :  { %2424 = vmatprep.subr.bf16.mxu1 %v3833_v14  ;;  %3349 = vmatprep.subr.bf16.mxu0 %v3866_v61  ;;  %v3896_v14 = vld [vmem:[#allocation11 + $0x130] sm:$0xff]   ;;  %v3897_v61 = vld [vmem:[#allocation11 + $0x168] sm:$0xff]  }
 0x1fd   :  { %2425 = vmatpush1.bf16.msra.mxu1 %v3831_v62  ;;  %3350 = vmatpush3.bf16.msra.mxu0 %v3867_v63  ;;  %v3884_v62 = vld [vmem:[#allocation11 + $0xa0] sm:$0xff]   ;;  %v3885_v63 = vld [vmem:[#allocation11 + $0xd8] sm:$0xff]  }
 0x1fe   :  { %2426 = vmatprep.subr.bf16.mxu1 %v3836_v51  ;;  %3351 = vmatprep.subr.bf16.mxu0 %v3871_v2  ;;  %v3898_v51 = vld [vmem:[#allocation11 + $0x128] sm:$0xff]   ;;  %v3899_v2 = vld [vmem:[#allocation11 + $0x160] sm:$0xff]  }
 0x201   :  { %2427 = vmatpush1.bf16.msra.mxu1 %v3834_v3  ;;  %3352 = vmatpush3.bf16.msra.mxu0 %v3872_v4  ;;  %v3886_v3 = vld [vmem:[#allocation11 + $0x98] sm:$0xff]   ;;  %v3887_v4 = vld [vmem:[#allocation11 + $0xd0] sm:$0xff]  }
 0x202   :  { %2428 = vmatprep.subr.bf16.mxu1 %v3839_v5  ;;  %3353 = vmatprep.subr.bf16.mxu0 %v3873_v6  ;;  %v3900_v5 = vld [vmem:[#allocation11 + $0x120] sm:$0xff]   ;;  %v3901_v6 = vld [vmem:[#allocation11 + $0x158] sm:$0xff]  }
 0x205   :  { %2429 = vmatpush2.bf16.msra.mxu1 %v3837_v7  ;;  %3354 = vmatpush3.bf16.msra.mxu0 %v3874_v8  ;;  %v3888_v7 = vld [vmem:[#allocation11 + $0x90] sm:$0xff]   ;;  %v3889_v8 = vld [vmem:[#allocation11 + $0xc8] sm:$0xff]  }
 0x206   :  { %2430 = vmatprep.subr.bf16.mxu1 %v3842_v9  ;;  %3355 = vmatprep.subr.bf16.mxu0 %v3875_v10  ;;  %v3902_v9 = vld [vmem:[#allocation11 + $0x118] sm:$0xff]   ;;  %v3903_v10 = vld [vmem:[#allocation11 + $0x150] sm:$0xff]  }
 0x209   :  { %2431 = vmatpush2.bf16.msra.mxu1 %v3840_v11  ;;  %3356 = vmatpush3.bf16.msra.mxu0 %v3876_v16  ;;  %v3890_v11 = vld [vmem:[#allocation11 + $0x88] sm:$0xff]   ;;  %v3891_v16 = vld [vmem:[#allocation11 + $0xc0] sm:$0xff]  }
 0x20a   :  { %2432 = vmatprep.subr.bf16.mxu1 %v3845_v17  ;;  %3363 = vmatprep.subr.bf16.mxu0 %v3877_v18  ;;  %v3904_v17 = vld [vmem:[#allocation11 + $0x110] sm:$0xff]   ;;  %v3892_v18 = vld [vmem:[#allocation11 + $0x80] sm:$0xff]  }
 0x20d   :  { %2433 = vmatpush2.bf16.msra.mxu1 %v3843_v19 }
 0x20e   :  { %2434 = vmatprep.subr.bf16.mxu1 %v3850_v21  ;;  %v625_v21 = vrot.slane %v4224_v31, %v135_v20 }
 0x211   :  { %2435 = vmatpush2.bf16.msra.mxu1 %v3848_v22  ;;  %v3905_v22 = vld [vmem:[#allocation11 + $0x148] sm:$0xff]  }
 0x212   :  { %2436 = vmatprep.subr.bf16.mxu1 %v3855_v24 }
 0x215   :  { %2437 = vmatpush2.bf16.msra.mxu1 %v3853_v25  ;;  %v3906_v25 = vld [vmem:[#allocation11 + $0x108] sm:$0xff]  }
 0x216   :  { %2438 = vmatprep.subr.bf16.mxu1 %v3860_v26  ;;  %v629_v26 = vrot.slane %v4224_v31, %v139_v23 }
 0x219   :  { %2439 = vmatpush2.bf16.msra.mxu1 %v3858_v27 }
 0x21a   :  { %2440 = vmatprep.subr.bf16.mxu1 %v3865_v28 }
 0x21d   :  { %2441 = vmatpush2.bf16.msra.mxu1 %v3863_v30  ;;  %v3907_v30 = vld [vmem:[#allocation11 + $0x140] sm:$0xff]  }
 0x21e   :  { %2442 = vmatprep.subr.bf16.mxu1 %v3870_v33 }
 0x221   :  { %2443 = vmatpush2.bf16.msra.mxu1 %v3868_v35 }
 0x222   :  { %3385 = vmatprep.subr.bf16.mxu1 %v3893_v57 }
 0x224   :  { %v2200_v43 = vpop.f32.mrf.mxu1  ;;  %2445 = vmatmul.mubr.bf16.vlgmr.msra.gmra.mxu1 %v4203_v1  ;;  %v3880_v1 = vld [vmem:[#allocation11 + $0xb0] sm:$0xff]  }
 0x225   :  { %v2201_v13 = vadd.f32 %v2200_v43, %v2160_v41  ;;  %3386 = vmatpush3.bf16.msra.mxu1 %v3894_v44 }
 0x226   :  { %v2202_v32 = vpop.f32.mrf.mxu1  ;;  %3387 = vmatprep.subr.bf16.mxu1 %v3895_v58 }
 0x227   :  { %v2203_v45 = vadd.f32 %v2202_v32, %v2162_v46  ;;  %v2453_v47 = vmax.f32 %v2201_v13, 0.0 }
 0x228   :  { %v2204_v0 = vpop.f32.mrf.mxu1 }
 0x229   :  { %v2454_v49 = vmax.f32 %v2203_v45, 0.0  ;;  %v2459_v34 = vpack.c.bf16 %v2453_v47, %v2453_v47  ;;  %3388 = vmatpush3.bf16.msra.mxu1 %v3896_v14 }
 0x22a   :  { %v2205_v52 = vpop.f32.mrf.mxu1  ;;  %3389 = vmatprep.subr.bf16.mxu1 %v3897_v61 }
 0x22b   :  { %v2460_v15 = vpack.c.bf16 %v2454_v49, %v2454_v49 }
 0x22c   :  { %v4237_v54 = vpop.f32.mrf.mxu0 }
 0x22d   :  { %2888 = vmatprep.mubr.bf16.mxu0 %v2460_v15  ;;  %3390 = vmatpush3.bf16.msra.mxu1 %v3898_v51  ;;  %v2242_v28 = vadd.f32 %v4237_v54, %v625_v21 }
 0x22e   :  { %v4239_v48 = vpop.f32.mrf.mxu0  ;;  %2889 = vmatmul.mubr.bf16.vlgmr.msra.gmra.mxu0 %v2459_v34  ;;  %3391 = vmatprep.subr.bf16.mxu1 %v3899_v2 }
 0x22f   :  { %3364 = vmatpush3.bf16.msra.mxu0 %v3878_v53  ;;  %v2244_v35 = vadd.f32 %v4239_v48, %v629_v26  ;;  %v633_v48 = vrot.slane %v4224_v31, %v143_v42 }
 0x230   :  { %v2245_v50 = vpop.f32.mrf.mxu0  ;;  %3365 = vmatprep.subr.bf16.mxu0 %v3879_v37 }
 0x231   :  { %3392 = vmatpush3.bf16.msra.mxu1 %v3900_v5 }
 0x232   :  { %v2246_v56 = vpop.f32.mrf.mxu0  ;;  %3393 = vmatprep.subr.bf16.mxu1 %v3901_v6 }
 0x233   :  { %3366 = vmatpush3.bf16.msra.mxu0 %v3880_v1  ;;  %v637_v1 = vrot.slane %v4224_v31, %v147_v40 }
 0x234   :  { %3367 = vmatprep.subr.bf16.mxu0 %v3881_v55 }
 0x235   :  { %3394 = vmatpush3.bf16.msra.mxu1 %v3902_v9 }
 0x236   :  { %3395 = vmatprep.subr.bf16.mxu1 %v3903_v10 }
 0x237   :  { %3368 = vmatpush3.bf16.msra.mxu0 %v3882_v59 }
 0x238   :  { %3369 = vmatprep.subr.bf16.mxu0 %v3883_v60 }
 0x239   :  { %3396 = vmatpush3.bf16.msra.mxu1 %v3904_v17 }
 0x23a   :  { %3397 = vmatprep.subr.bf16.mxu1 %v3905_v22 }
 0x23b   :  { %3370 = vmatpush3.bf16.msra.mxu0 %v3884_v62 }
 0x23c   :  { %3371 = vmatprep.subr.bf16.mxu0 %v3885_v63 }
 0x23d   :  { %3398 = vmatpush3.bf16.msra.mxu1 %v3906_v25 }
 0x23e   :  { %3399 = vmatprep.subr.bf16.mxu1 %v3907_v30 }
 0x23f   :  { %3372 = vmatpush3.bf16.msra.mxu0 %v3886_v3 }
 0x240   :  { %3373 = vmatprep.subr.bf16.mxu0 %v3887_v4  ;;  %v3292_v4 = vld [vmem:[#allocation13] ss:$0 sm:$0xff] }
 0x241   :  { %3400 = vmatpush3.bf16.msra.mxu1 %v3908_v29 }
 0x243   :  { %3374 = vmatpush3.bf16.msra.mxu0 %v3888_v7 }
 0x244   :  { %3375 = vmatprep.subr.bf16.mxu0 %v3889_v8 }
 0x247   :  { %3376 = vmatpush3.bf16.msra.mxu0 %v3890_v11 }
 0x248   :  { %3377 = vmatprep.subr.bf16.mxu0 %v3891_v16 }
 0x24b   :  { %3378 = vmatpush3.bf16.msra.mxu0 %v3892_v18 }
 0x264   :  { %v2282_v19 = vpop.f32.mrf.mxu1 }
 0x265   :  { %v2283_v36 = vadd.f32 %v2282_v19, %v2242_v28 }
 0x266   :  { %v2284_v24 = vpop.f32.mrf.mxu1 }
 0x267   :  { %v2285_v38 = vadd.f32 %v2284_v24, %v2244_v35 }
 0x268   :  { %v2286_v27 = vpop.f32.mrf.mxu1 }
 0x26a   :  { %v2287_v33 = vpop.f32.mrf.mxu1 }
 0x26c   :  { %v2323_v20 = vpop.f32.mrf.mxu0 }
 0x26d   :  { %v2324_v39 = vadd.f32 %v2323_v20, %v2283_v36 }
 0x26e   :  { %v2325_v41 = vpop.f32.mrf.mxu0 }
 0x26f   :  { %v2326_v43 = vadd.f32 %v2325_v41, %v2285_v38  ;;  %v2455_v46 = vmax.f32 %v2324_v39, 0.0 }
 0x270   :  { %v2327_v23 = vpop.f32.mrf.mxu0 }
 0x271   :  { %v2456_v13 = vmax.f32 %v2326_v43, 0.0  ;;  %v2461_v47 = vpack.c.bf16 %v2455_v46, %v2455_v46 }
 0x272   :  { %v2328_v32 = vpop.f32.mrf.mxu0 }
 0x273   :  { %v2462_v45 = vpack.c.bf16 %v2456_v13, %v2456_v13 }
 0x275   :  { %2928 = vmatprep.mubr.bf16.mxu0 %v2462_v45 }
 0x276   :  { %2929 = vmatmul.mubr.bf16.vlgmr.msra.gmra.mxu0 %v2461_v47 }
 0x2a4   :  { %v2364_v0 = vpop.f32.mrf.mxu1 }
 0x2a5   :  { %v2365_v50 = vadd.f32 %v2364_v0, %v633_v48 }
 0x2a6   :  { %v2366_v49 = vpop.f32.mrf.mxu1 }
 0x2a7   :  { %v2367_v55 = vadd.f32 %v2366_v49, %v637_v1 }
 0x2a8   :  { %v2368_v52 = vpop.f32.mrf.mxu1 }
 0x2aa   :  { %v2369_v15 = vpop.f32.mrf.mxu1 }
 0x2ac   :  { %v2405_v53 = vpop.f32.mrf.mxu0 }
 0x2ad   :  { %v2406_v56 = vadd.f32 %v2405_v53, %v2365_v50 }
 0x2ae   :  { %v2407_v34 = vpop.f32.mrf.mxu0 }
 0x2af   :  { %v2408_v44 = vadd.f32 %v2407_v34, %v2367_v55 }
 0x2b0   :  { %v2409_v54 = vpop.f32.mrf.mxu0 }
 0x2b2   :  { %v2410_v37 = vpop.f32.mrf.mxu0 }
 0x2e4   :  { %v2446_v57 = vpop.f32.mrf.mxu1 }
 0x2e5   :  { %v2447_v58 = vadd.f32 %v2446_v57, %v2406_v56 }
 0x2e6   :  { %v2448_v59 = vpop.f32.mrf.mxu1 }
 0x2e7   :  { %v2449_v60 = vadd.f32 %v2448_v59, %v2408_v44  ;;  %v2457_v14 = vmax.f32 %v2447_v58, 0.0 }
 0x2e8   :  { %v2450_v61 = vpop.f32.mrf.mxu1 }
 0x2e9   :  { %v2458_v62 = vmax.f32 %v2449_v60, 0.0  ;;  %v2463_v2 = vpack.c.bf16 %v2457_v14, %v2457_v14 }
 0x2ea   :  { %v2451_v63 = vpop.f32.mrf.mxu1 }
 0x2eb   :  { %v2464_v51 = vpack.c.bf16 %v2458_v62, %v2458_v62 }
 0x2ed   :  { %2968 = vmatprep.mubr.bf16.mxu1 %v2464_v51 }
 0x2ee   :  { %v3357_v42 = vpop.f32.mrf.mxu0  ;;  %2969 = vmatmul.mubr.bf16.vlgmr.msra.gmra.mxu1 %v2463_v2 }
 0x2f0   :  { %v3358_v12 = vpop.f32.mrf.mxu0 }
 0x2f1   :  { %v3359_v3 = vadd.f32 %v3358_v12, %v3357_v42 }
 0x2f2   :  { %v3360_v40 = vpop.f32.mrf.mxu0 }
 0x2f3   :  { %v2891_v7 = vadd.f32 %v3359_v3, %v3292_v4 }
 0x2f4   :  { %v3361_v31 = vpop.f32.mrf.mxu0 }
 0x336   :  { %v3379_v5 = vpop.f32.mrf.mxu0 }
 0x338   :  { %v3380_v6 = vpop.f32.mrf.mxu0 }
 0x339   :  { %v3381_v8 = vadd.f32 %v3380_v6, %v3379_v5 }
 0x33a   :  { %v3382_v9 = vpop.f32.mrf.mxu0 }
 0x33b   :  { %v2931_v10 = vadd.f32 %v3381_v8, %v2891_v7 }
 0x33c   :  { %v3383_v11 = vpop.f32.mrf.mxu0 }
 0x3ae   :  { %v3401_v16 = vpop.f32.mrf.mxu1 }
 0x3b0   :  { %v3402_v17 = vpop.f32.mrf.mxu1 }
 0x3b1   :  { %v3403_v18 = vadd.f32 %v3402_v17, %v3401_v16 }
 0x3b2   :  { %v3404_v19 = vpop.f32.mrf.mxu1 }
 0x3b3   :  { %v2971_v21 = vadd.f32 %v3403_v18, %v2931_v10 }
 0x3b4   :  { %v3405_v22 = vpop.f32.mrf.mxu1 }
 0x3b5   :  { %2976 = vst [vmem:[#allocation14] sm:$0x3] %v2971_v21 }
 0x3b6   :  { %4060 = shalt.err (!%p4057_p11)
}
 0x3b7   :  { %2986 = dma.vmem_to_hbm [thread:$0]  %s2984_s6, 32, %s4265_s7, [#allocation4]  }
 0x3b8   :  { %4077 = dma.done.wait [#allocation4], 32  }
 0x3b9   :  { %4078 = vsyncadd [#allocation4], 4294967264 }
 0x3ba   :  { %2990 = vsyncpa [#allocation3], 1 }
 0x3bb   :  { %2991 = vsyncpa [#allocation6], 1 }
 0x3bc   :  { %2992 = vsyncpa [#allocation9], 1 }
 0x3bd   :  { %2993 = vsyncpa [#allocation12], 1 }
 0x3be   :  { %2994 = vsyncpa [#allocation4], 1 }

</bundles_post_ra>
